<compile_context>
chip_gen: v7x
topology: tpu7x:2x2x1
jax: 0.10.0
libtpu: 0.0.40
codegen_flags: <defaults>
</compile_context>

<pallas_src>
import functools

import jax
import jax.numpy as jnp
from jax import lax
from jax.experimental import pallas as pl
from jax.experimental.pallas import tpu as pltpu


# ---------------------------------------------------------------------------
# Kernel 1: ReLU -> dilated 3x3 conv (9-tap implicit GEMM) + BN batch stats
# ---------------------------------------------------------------------------
def _conv_stats_kernel(x_ref, w_ref, mask_ref, y_ref, sum_ref, sumsq_ref,
                       acc_ref, *, H, Wp, dil):
    """One (batch n, Cout-tile j) grid step.

    x_ref    : (1, L_in, Cin) bf16  zero-padded input, rows = row-major (h, w)
    w_ref    : (9, Cin, TN)   bf16  conv taps for this Cout tile
    mask_ref : (8, HWp)       f32   1.0 on valid columns (w < W), rows identical
    y_ref    : (1, HWp, TN)   bf16  conv output (over-wide rows; cols >= W junk)
    sum_ref / sumsq_ref : (1, 8, TN) f32  per-channel partial statistics
    acc_ref  : (HWp, TN)      f32   VMEM scratch accumulator
    """
    HWp = H * Wp
    band = HWp + 2 * dil * Wp            # rows needed by each kw-shifted copy

    # Fused leading ReLU (bf16 in / bf16 out).
    x = jnp.maximum(x_ref[0], 0)

    # Build the 3 kw-shifted copies once (3 sublane shifts instead of 9);
    # the per-kh slices below start at multiples of dil*Wp (8-aligned for the
    # shapes of interest), so they are cheap aligned views.
    bands = [x[kw * dil:kw * dil + band, :] for kw in range(3)]

    for kh in range(3):
        row_off = kh * dil * Wp
        for kw in range(3):
            patch = bands[kw][row_off:row_off + HWp, :]          # (HWp, Cin)
            tap = jnp.dot(patch, w_ref[kh * 3 + kw],
                          preferred_element_type=jnp.float32)    # (HWp, TN)
            if kh == 0 and kw == 0:
                acc_ref[...] = tap
            else:
                acc_ref[...] += tap

    acc = acc_ref[...]                                           # f32
    y_ref[0] = acc.astype(y_ref.dtype)

    # Per-channel statistics over the *valid* columns only, computed as a
    # masked ones-rows matmul so the reduction rides the MXU, not the XLU.
    m = mask_ref[...]                                            # (8, HWp)
    sum_ref[0] = jnp.dot(m, acc, preferred_element_type=jnp.float32)
    sumsq_ref[0] = jnp.dot(m, acc * acc, preferred_element_type=jnp.float32)


# ---------------------------------------------------------------------------
# Kernel 2: y * scale + shift, then ReLU (scale/shift fold mean/var/gamma/beta)
# ---------------------------------------------------------------------------
def _bn_relu_kernel(y_ref, scale_ref, shift_ref, o_ref):
    y = y_ref[...].astype(jnp.float32)               # (1, TR, C)
    out = y * scale_ref[...] + shift_ref[...]        # (1, 1, C) broadcasts
    o_ref[...] = jnp.maximum(out, 0.0).astype(o_ref.dtype)


def _row_tile(rows, target=256):
    """Largest divisor of `rows` that is a multiple of 8 and <= target."""
    for t in range(min(rows, target), 7, -1):
        if rows % t == 0 and t % 8 == 0:
            return t
    return rows


# ---------------------------------------------------------------------------
# Wrapper
# ---------------------------------------------------------------------------
def relu_conv_bn_relu(x_nchw, w_oihw, gamma, beta, *, eps=1e-5, pad=2, dil=2):
    N, Cin, H, W = x_nchw.shape
    Cout = w_oihw.shape[0]
    Hp, Wp = H + 2 * pad, W + 2 * pad
    HWp = H * Wp                      # rows of the (over-wide) conv output
    L_in = Hp * Wp + 8                # spare zero rows for the kw shifts

    # ---- layout plumbing (one fused XLA pass each way) ----------------------
    # NCHW -> NHWC, zero-pad the halo, flatten (h, w) row-major, cast to bf16.
    x_nhwc = jnp.transpose(x_nchw, (0, 2, 3, 1)).astype(jnp.float32)
    x_pad = jnp.pad(x_nhwc, ((0, 0), (pad, pad), (pad, pad), (0, 0)))
    x_flat = jnp.pad(x_pad.reshape(N, Hp * Wp, Cin),
                     ((0, 0), (0, L_in - Hp * Wp), (0, 0)))
    x_flat = x_flat.astype(jnp.bfloat16)

    # OIHW -> (kh*3+kw, Cin, Cout), bf16 for the MXU.
    w_taps = jnp.transpose(w_oihw, (2, 3, 1, 0)).reshape(9, Cin, Cout)
    w_taps = w_taps.astype(jnp.bfloat16)

    # Valid-column mask (columns >= W of each over-wide row are garbage).
    col = jnp.arange(HWp, dtype=jnp.int32) % Wp
    mask8 = jnp.tile((col < W).astype(jnp.float32)[None, :], (8, 1))  # (8,HWp)

    # Cout lane tiling keeps the accumulator small and parallelizes the grid.
    if Cout % 256 == 0:
        TN = 256
    elif Cout % 128 == 0:
        TN = 128
    else:
        TN = Cout
    J = Cout // TN

    conv_out, csum, csumsq = pl.pallas_call(
        functools.partial(_conv_stats_kernel, H=H, Wp=Wp, dil=dil),
        out_shape=(
            jax.ShapeDtypeStruct((N, HWp, Cout), jnp.bfloat16),
            jax.ShapeDtypeStruct((N, 8, Cout), jnp.float32),
            jax.ShapeDtypeStruct((N, 8, Cout), jnp.float32),
        ),
        grid_spec=pltpu.PrefetchScalarGridSpec(
            num_scalar_prefetch=0,
            grid=(N, J),
            in_specs=[
                pl.BlockSpec((1, L_in, Cin), lambda n, j: (n, 0, 0)),
                pl.BlockSpec((9, Cin, TN), lambda n, j: (0, 0, j)),
                pl.BlockSpec((8, HWp), lambda n, j: (0, 0)),
            ],
            out_specs=[
                pl.BlockSpec((1, HWp, TN), lambda n, j: (n, 0, j)),
                pl.BlockSpec((1, 8, TN), lambda n, j: (n, 0, j)),
                pl.BlockSpec((1, 8, TN), lambda n, j: (n, 0, j)),
            ],
            scratch_shapes=[pltpu.VMEM((HWp, TN), jnp.float32)],
        ),
        compiler_params=pltpu.CompilerParams(
            dimension_semantics=("parallel", "parallel"),
            vmem_limit_bytes=32 * 1024 * 1024),
    )(x_flat, w_taps, mask8)

    # ---- fold batch statistics into a per-channel scale/shift (tiny) --------
    count = jnp.float32(N * H * W)
    total = jnp.sum(csum[:, 0, :], axis=0)          # (Cout,)
    totalsq = jnp.sum(csumsq[:, 0, :], axis=0)
    mean = total / count
    var = totalsq / count - mean * mean             # biased var (BN training)
    inv_std = lax.rsqrt(var + eps)
    g = gamma.astype(jnp.float32)
    b = beta.astype(jnp.float32)
    scale = (g * inv_std).reshape(1, 1, Cout)
    shift = (b - mean * g * inv_std).reshape(1, 1, Cout)

    # ---- BN affine + trailing ReLU ------------------------------------------
    TR = _row_tile(HWp)
    out_flat = pl.pallas_call(
        _bn_relu_kernel,
        out_shape=jax.ShapeDtypeStruct((N, HWp, Cout), jnp.float32),
        grid_spec=pltpu.PrefetchScalarGridSpec(
            num_scalar_prefetch=0,
            grid=(N, HWp // TR),
            in_specs=[
                pl.BlockSpec((1, TR, Cout), lambda n, r: (n, r, 0)),
                pl.BlockSpec((1, 1, Cout), lambda n, r: (0, 0, 0)),
                pl.BlockSpec((1, 1, Cout), lambda n, r: (0, 0, 0)),
            ],
            out_specs=pl.BlockSpec((1, TR, Cout), lambda n, r: (n, r, 0)),
        ),
        compiler_params=pltpu.CompilerParams(
            dimension_semantics=("parallel", "parallel")),
    )(conv_out, scale, shift)

    # Drop the over-wide columns and go back to NCHW (PyTorch convention).
    out = out_flat.reshape(N, H, Wp, Cout)[:, :, :W, :]
    return jnp.transpose(out, (0, 3, 1, 2))


# ---------------------------------------------------------------------------
# Pure-JAX reference (f32) for correctness checking
# ---------------------------------------------------------------------------
def reference(x_nchw, w_oihw, gamma, beta, *, eps=1e-5, pad=2, dil=2):
    x = jnp.maximum(x_nchw, 0.0)
    y = lax.conv_general_dilated(
        x, w_oihw, window_strides=(1, 1), padding=((pad, pad), (pad, pad)),
        rhs_dilation=(dil, dil),
        dimension_numbers=("NCHW", "OIHW", "NCHW"))
    mean = jnp.mean(y, axis=(0, 2, 3), keepdims=True)
    var = jnp.var(y, axis=(0, 2, 3), keepdims=True)      # biased, like BN
    yn = (y - mean) / jnp.sqrt(var + eps)
    out = yn * gamma[None, :, None, None] + beta[None, :, None, None]
    return jnp.maximum(out, 0.0)


if __name__ == "__main__":
    # Small, hardware-friendly shapes consistent with the module's structure
    # (original: N=1, C=512, H=W=28 -> here N=2, C=128, H=W=16).
    N, C, H, W = 2, 128, 16, 16

    key = jax.random.PRNGKey(0)
    kx, kw, kg, kb = jax.random.split(key, 4)

    x = jax.random.normal(kx, (N, C, H, W), dtype=jnp.float32)         # NCHW
    w = jax.random.normal(kw, (C, C, 3, 3), dtype=jnp.float32) * 0.05  # OIHW
    gamma = 1.0 + 0.1 * jax.random.normal(kg, (C,), dtype=jnp.float32)
    beta = 0.1 * jax.random.normal(kb, (C,), dtype=jnp.float32)

    out = jax.block_until_ready(relu_conv_bn_relu(x, w, gamma, beta))
    ref = jax.block_until_ready(reference(x, w, gamma, beta))

    assert out.shape == (N, C, H, W), out.shape
    # bf16 MXU operands + bf16 conv intermediate -> slightly relaxed tolerance
    assert jnp.allclose(out, ref, rtol=2e-2, atol=2e-2), (
        float(jnp.max(jnp.abs(out - ref))))

    print("KERNEL_OK")
</pallas_src>

<mosaic_0001>
module attributes {stable_mosaic.version = 11 : i64} {
  func.func @_conv_stats_kernel(%arg0: i32, %arg1: i32, %arg2: memref<1x408x128xbf16, #tpu.memory_space<vmem>>, %arg3: memref<9x128x128xbf16, #tpu.memory_space<vmem>>, %arg4: memref<8x320xf32, #tpu.memory_space<vmem>>, %arg5: memref<1x320x128xbf16, #tpu.memory_space<vmem>>, %arg6: memref<1x8x128xf32, #tpu.memory_space<vmem>>, %arg7: memref<1x8x128xf32, #tpu.memory_space<vmem>>, %arg8: memref<320x128xf32, #tpu.memory_space<vmem>>) attributes {dimension_semantics = [#tpu.dimension_semantics<parallel>, #tpu.dimension_semantics<parallel>], iteration_bounds = array<i64: 2, 1>, scalar_prefetch = 0 : i64, scratch_operands = 1 : i64, tpu.core_type = #tpu.core_type<tc>, window_params = [{transform_indices = @transform_0, window_bounds = array<i64: 1, 408, 128>}, {transform_indices = @transform_1, window_bounds = array<i64: 9, 128, 128>}, {pipeline_mode = #tpu.pipeline_mode<synchronous>, transform_indices = @transform_2, window_bounds = array<i64: 8, 320>}, {transform_indices = @transform_3, window_bounds = array<i64: 1, 320, 128>}, {transform_indices = @transform_4, window_bounds = array<i64: 1, 8, 128>}, {transform_indices = @transform_5, window_bounds = array<i64: 1, 8, 128>}]} {
    %c0 = arith.constant 0 : index
    %c0_0 = arith.constant 0 : index
    %c0_1 = arith.constant 0 : index
    %0 = vector.load %arg2[%c0, %c0_0, %c0_1] : memref<1x408x128xbf16, #tpu.memory_space<vmem>>, vector<1x408x128xbf16>
    %1 = vector.shape_cast %0 : vector<1x408x128xbf16> to vector<408x128xbf16>
    %cst = arith.constant 0.000000e+00 : bf16
    %2 = vector.broadcast %cst : bf16 to vector<408x128xbf16>
    %3 = arith.maximumf %1, %2 : vector<408x128xbf16>
    %4 = vector.extract_strided_slice %3 {offsets = [0, 0], sizes = [400, 128], strides = [1, 1]} : vector<408x128xbf16> to vector<400x128xbf16>
    %5 = vector.extract_strided_slice %3 {offsets = [2, 0], sizes = [400, 128], strides = [1, 1]} : vector<408x128xbf16> to vector<400x128xbf16>
    %6 = vector.extract_strided_slice %3 {offsets = [4, 0], sizes = [400, 128], strides = [1, 1]} : vector<408x128xbf16> to vector<400x128xbf16>
    %7 = vector.extract_strided_slice %4 {offsets = [0, 0], sizes = [320, 128], strides = [1, 1]} : vector<400x128xbf16> to vector<320x128xbf16>
    %c0_2 = arith.constant 0 : index
    %c0_3 = arith.constant 0 : index
    %c0_4 = arith.constant 0 : index
    %8 = vector.load %arg3[%c0_2, %c0_3, %c0_4] : memref<9x128x128xbf16, #tpu.memory_space<vmem>>, vector<1x128x128xbf16>
    %9 = vector.shape_cast %8 : vector<1x128x128xbf16> to vector<128x128xbf16>
    %cst_5 = arith.constant dense<0.000000e+00> : vector<320x128xf32>
    %10 = tpu.matmul %7, %9, %cst_5 {dimension_numbers = #tpu.dot_dimension_numbers<[1], [0], [0], [1], [0, 0, 1, 1], [], []>} : vector<320x128xbf16>, vector<128x128xbf16>, vector<320x128xf32> -> vector<320x128xf32>
    %c0_6 = arith.constant 0 : index
    %c0_7 = arith.constant 0 : index
    %11 = vector.load %arg8[%c0_6, %c0_7] : memref<320x128xf32, #tpu.memory_space<vmem>>, vector<320x128xf32>
    tpu.vector_store %arg8[%c0_6, %c0_7], %10 {strides = array<i32>} : memref<320x128xf32, #tpu.memory_space<vmem>>, vector<320x128xf32>,
    %12 = vector.extract_strided_slice %5 {offsets = [0, 0], sizes = [320, 128], strides = [1, 1]} : vector<400x128xbf16> to vector<320x128xbf16>
    %c1 = arith.constant 1 : index
    %c0_8 = arith.constant 0 : index
    %c0_9 = arith.constant 0 : index
    %13 = vector.load %arg3[%c1, %c0_8, %c0_9] : memref<9x128x128xbf16, #tpu.memory_space<vmem>>, vector<1x128x128xbf16>
    %14 = vector.shape_cast %13 : vector<1x128x128xbf16> to vector<128x128xbf16>
    %cst_10 = arith.constant dense<0.000000e+00> : vector<320x128xf32>
    %15 = tpu.matmul %12, %14, %cst_10 {dimension_numbers = #tpu.dot_dimension_numbers<[1], [0], [0], [1], [0, 0, 1, 1], [], []>} : vector<320x128xbf16>, vector<128x128xbf16>, vector<320x128xf32> -> vector<320x128xf32>
    %c0_11 = arith.constant 0 : index
    %c0_12 = arith.constant 0 : index
    %16 = vector.load %arg8[%c0_11, %c0_12] : memref<320x128xf32, #tpu.memory_space<vmem>>, vector<320x128xf32>
    %17 = arith.addf %16, %15 : vector<320x128xf32>
    %c0_13 = arith.constant 0 : index
    %c0_14 = arith.constant 0 : index
    %18 = vector.load %arg8[%c0_13, %c0_14] : memref<320x128xf32, #tpu.memory_space<vmem>>, vector<320x128xf32>
    tpu.vector_store %arg8[%c0_13, %c0_14], %17 {strides = array<i32>} : memref<320x128xf32, #tpu.memory_space<vmem>>, vector<320x128xf32>,
    %19 = vector.extract_strided_slice %6 {offsets = [0, 0], sizes = [320, 128], strides = [1, 1]} : vector<400x128xbf16> to vector<320x128xbf16>
    %c2 = arith.constant 2 : index
    %c0_15 = arith.constant 0 : index
    %c0_16 = arith.constant 0 : index
    %20 = vector.load %arg3[%c2, %c0_15, %c0_16] : memref<9x128x128xbf16, #tpu.memory_space<vmem>>, vector<1x128x128xbf16>
    %21 = vector.shape_cast %20 : vector<1x128x128xbf16> to vector<128x128xbf16>
    %cst_17 = arith.constant dense<0.000000e+00> : vector<320x128xf32>
    %22 = tpu.matmul %19, %21, %cst_17 {dimension_numbers = #tpu.dot_dimension_numbers<[1], [0], [0], [1], [0, 0, 1, 1], [], []>} : vector<320x128xbf16>, vector<128x128xbf16>, vector<320x128xf32> -> vector<320x128xf32>
    %c0_18 = arith.constant 0 : index
    %c0_19 = arith.constant 0 : index
    %23 = vector.load %arg8[%c0_18, %c0_19] : memref<320x128xf32, #tpu.memory_space<vmem>>, vector<320x128xf32>
    %24 = arith.addf %23, %22 : vector<320x128xf32>
    %c0_20 = arith.constant 0 : index
    %c0_21 = arith.constant 0 : index
    %25 = vector.load %arg8[%c0_20, %c0_21] : memref<320x128xf32, #tpu.memory_space<vmem>>, vector<320x128xf32>
    tpu.vector_store %arg8[%c0_20, %c0_21], %24 {strides = array<i32>} : memref<320x128xf32, #tpu.memory_space<vmem>>, vector<320x128xf32>,
    %26 = vector.extract_strided_slice %4 {offsets = [40, 0], sizes = [320, 128], strides = [1, 1]} : vector<400x128xbf16> to vector<320x128xbf16>
    %c3 = arith.constant 3 : index
    %c0_22 = arith.constant 0 : index
    %c0_23 = arith.constant 0 : index
    %27 = vector.load %arg3[%c3, %c0_22, %c0_23] : memref<9x128x128xbf16, #tpu.memory_space<vmem>>, vector<1x128x128xbf16>
    %28 = vector.shape_cast %27 : vector<1x128x128xbf16> to vector<128x128xbf16>
    %cst_24 = arith.constant dense<0.000000e+00> : vector<320x128xf32>
    %29 = tpu.matmul %26, %28, %cst_24 {dimension_numbers = #tpu.dot_dimension_numbers<[1], [0], [0], [1], [0, 0, 1, 1], [], []>} : vector<320x128xbf16>, vector<128x128xbf16>, vector<320x128xf32> -> vector<320x128xf32>
    %c0_25 = arith.constant 0 : index
    %c0_26 = arith.constant 0 : index
    %30 = vector.load %arg8[%c0_25, %c0_26] : memref<320x128xf32, #tpu.memory_space<vmem>>, vector<320x128xf32>
    %31 = arith.addf %30, %29 : vector<320x128xf32>
    %c0_27 = arith.constant 0 : index
    %c0_28 = arith.constant 0 : index
    %32 = vector.load %arg8[%c0_27, %c0_28] : memref<320x128xf32, #tpu.memory_space<vmem>>, vector<320x128xf32>
    tpu.vector_store %arg8[%c0_27, %c0_28], %31 {strides = array<i32>} : memref<320x128xf32, #tpu.memory_space<vmem>>, vector<320x128xf32>,
    %33 = vector.extract_strided_slice %5 {offsets = [40, 0], sizes = [320, 128], strides = [1, 1]} : vector<400x128xbf16> to vector<320x128xbf16>
    %c4 = arith.constant 4 : index
    %c0_29 = arith.constant 0 : index
    %c0_30 = arith.constant 0 : index
    %34 = vector.load %arg3[%c4, %c0_29, %c0_30] : memref<9x128x128xbf16, #tpu.memory_space<vmem>>, vector<1x128x128xbf16>
    %35 = vector.shape_cast %34 : vector<1x128x128xbf16> to vector<128x128xbf16>
    %cst_31 = arith.constant dense<0.000000e+00> : vector<320x128xf32>
    %36 = tpu.matmul %33, %35, %cst_31 {dimension_numbers = #tpu.dot_dimension_numbers<[1], [0], [0], [1], [0, 0, 1, 1], [], []>} : vector<320x128xbf16>, vector<128x128xbf16>, vector<320x128xf32> -> vector<320x128xf32>
    %c0_32 = arith.constant 0 : index
    %c0_33 = arith.constant 0 : index
    %37 = vector.load %arg8[%c0_32, %c0_33] : memref<320x128xf32, #tpu.memory_space<vmem>>, vector<320x128xf32>
    %38 = arith.addf %37, %36 : vector<320x128xf32>
    %c0_34 = arith.constant 0 : index
    %c0_35 = arith.constant 0 : index
    %39 = vector.load %arg8[%c0_34, %c0_35] : memref<320x128xf32, #tpu.memory_space<vmem>>, vector<320x128xf32>
    tpu.vector_store %arg8[%c0_34, %c0_35], %38 {strides = array<i32>} : memref<320x128xf32, #tpu.memory_space<vmem>>, vector<320x128xf32>,
    %40 = vector.extract_strided_slice %6 {offsets = [40, 0], sizes = [320, 128], strides = [1, 1]} : vector<400x128xbf16> to vector<320x128xbf16>
    %c5 = arith.constant 5 : index
    %c0_36 = arith.constant 0 : index
    %c0_37 = arith.constant 0 : index
    %41 = vector.load %arg3[%c5, %c0_36, %c0_37] : memref<9x128x128xbf16, #tpu.memory_space<vmem>>, vector<1x128x128xbf16>
    %42 = vector.shape_cast %41 : vector<1x128x128xbf16> to vector<128x128xbf16>
    %cst_38 = arith.constant dense<0.000000e+00> : vector<320x128xf32>
    %43 = tpu.matmul %40, %42, %cst_38 {dimension_numbers = #tpu.dot_dimension_numbers<[1], [0], [0], [1], [0, 0, 1, 1], [], []>} : vector<320x128xbf16>, vector<128x128xbf16>, vector<320x128xf32> -> vector<320x128xf32>
    %c0_39 = arith.constant 0 : index
    %c0_40 = arith.constant 0 : index
    %44 = vector.load %arg8[%c0_39, %c0_40] : memref<320x128xf32, #tpu.memory_space<vmem>>, vector<320x128xf32>
    %45 = arith.addf %44, %43 : vector<320x128xf32>
    %c0_41 = arith.constant 0 : index
    %c0_42 = arith.constant 0 : index
    %46 = vector.load %arg8[%c0_41, %c0_42] : memref<320x128xf32, #tpu.memory_space<vmem>>, vector<320x128xf32>
    tpu.vector_store %arg8[%c0_41, %c0_42], %45 {strides = array<i32>} : memref<320x128xf32, #tpu.memory_space<vmem>>, vector<320x128xf32>,
    %47 = vector.extract_strided_slice %4 {offsets = [80, 0], sizes = [320, 128], strides = [1, 1]} : vector<400x128xbf16> to vector<320x128xbf16>
    %c6 = arith.constant 6 : index
    %c0_43 = arith.constant 0 : index
    %c0_44 = arith.constant 0 : index
    %48 = vector.load %arg3[%c6, %c0_43, %c0_44] : memref<9x128x128xbf16, #tpu.memory_space<vmem>>, vector<1x128x128xbf16>
    %49 = vector.shape_cast %48 : vector<1x128x128xbf16> to vector<128x128xbf16>
    %cst_45 = arith.constant dense<0.000000e+00> : vector<320x128xf32>
    %50 = tpu.matmul %47, %49, %cst_45 {dimension_numbers = #tpu.dot_dimension_numbers<[1], [0], [0], [1], [0, 0, 1, 1], [], []>} : vector<320x128xbf16>, vector<128x128xbf16>, vector<320x128xf32> -> vector<320x128xf32>
    %c0_46 = arith.constant 0 : index
    %c0_47 = arith.constant 0 : index
    %51 = vector.load %arg8[%c0_46, %c0_47] : memref<320x128xf32, #tpu.memory_space<vmem>>, vector<320x128xf32>
    %52 = arith.addf %51, %50 : vector<320x128xf32>
    %c0_48 = arith.constant 0 : index
    %c0_49 = arith.constant 0 : index
    %53 = vector.load %arg8[%c0_48, %c0_49] : memref<320x128xf32, #tpu.memory_space<vmem>>, vector<320x128xf32>
    tpu.vector_store %arg8[%c0_48, %c0_49], %52 {strides = array<i32>} : memref<320x128xf32, #tpu.memory_space<vmem>>, vector<320x128xf32>,
    %54 = vector.extract_strided_slice %5 {offsets = [80, 0], sizes = [320, 128], strides = [1, 1]} : vector<400x128xbf16> to vector<320x128xbf16>
    %c7 = arith.constant 7 : index
    %c0_50 = arith.constant 0 : index
    %c0_51 = arith.constant 0 : index
    %55 = vector.load %arg3[%c7, %c0_50, %c0_51] : memref<9x128x128xbf16, #tpu.memory_space<vmem>>, vector<1x128x128xbf16>
    %56 = vector.shape_cast %55 : vector<1x128x128xbf16> to vector<128x128xbf16>
    %cst_52 = arith.constant dense<0.000000e+00> : vector<320x128xf32>
    %57 = tpu.matmul %54, %56, %cst_52 {dimension_numbers = #tpu.dot_dimension_numbers<[1], [0], [0], [1], [0, 0, 1, 1], [], []>} : vector<320x128xbf16>, vector<128x128xbf16>, vector<320x128xf32> -> vector<320x128xf32>
    %c0_53 = arith.constant 0 : index
    %c0_54 = arith.constant 0 : index
    %58 = vector.load %arg8[%c0_53, %c0_54] : memref<320x128xf32, #tpu.memory_space<vmem>>, vector<320x128xf32>
    %59 = arith.addf %58, %57 : vector<320x128xf32>
    %c0_55 = arith.constant 0 : index
    %c0_56 = arith.constant 0 : index
    %60 = vector.load %arg8[%c0_55, %c0_56] : memref<320x128xf32, #tpu.memory_space<vmem>>, vector<320x128xf32>
    tpu.vector_store %arg8[%c0_55, %c0_56], %59 {strides = array<i32>} : memref<320x128xf32, #tpu.memory_space<vmem>>, vector<320x128xf32>,
    %61 = vector.extract_strided_slice %6 {offsets = [80, 0], sizes = [320, 128], strides = [1, 1]} : vector<400x128xbf16> to vector<320x128xbf16>
    %c8 = arith.constant 8 : index
    %c0_57 = arith.constant 0 : index
    %c0_58 = arith.constant 0 : index
    %62 = vector.load %arg3[%c8, %c0_57, %c0_58] : memref<9x128x128xbf16, #tpu.memory_space<vmem>>, vector<1x128x128xbf16>
    %63 = vector.shape_cast %62 : vector<1x128x128xbf16> to vector<128x128xbf16>
    %cst_59 = arith.constant dense<0.000000e+00> : vector<320x128xf32>
    %64 = tpu.matmul %61, %63, %cst_59 {dimension_numbers = #tpu.dot_dimension_numbers<[1], [0], [0], [1], [0, 0, 1, 1], [], []>} : vector<320x128xbf16>, vector<128x128xbf16>, vector<320x128xf32> -> vector<320x128xf32>
    %c0_60 = arith.constant 0 : index
    %c0_61 = arith.constant 0 : index
    %65 = vector.load %arg8[%c0_60, %c0_61] : memref<320x128xf32, #tpu.memory_space<vmem>>, vector<320x128xf32>
    %66 = arith.addf %65, %64 : vector<320x128xf32>
    %c0_62 = arith.constant 0 : index
    %c0_63 = arith.constant 0 : index
    %67 = vector.load %arg8[%c0_62, %c0_63] : memref<320x128xf32, #tpu.memory_space<vmem>>, vector<320x128xf32>
    tpu.vector_store %arg8[%c0_62, %c0_63], %66 {strides = array<i32>} : memref<320x128xf32, #tpu.memory_space<vmem>>, vector<320x128xf32>,
    %c0_64 = arith.constant 0 : index
    %c0_65 = arith.constant 0 : index
    %68 = vector.load %arg8[%c0_64, %c0_65] : memref<320x128xf32, #tpu.memory_space<vmem>>, vector<320x128xf32>
    %69 = arith.truncf %68 : vector<320x128xf32> to vector<320x128xbf16>
    %c0_66 = arith.constant 0 : index
    %c0_67 = arith.constant 0 : index
    %c0_68 = arith.constant 0 : index
    %70 = vector.load %arg5[%c0_66, %c0_67, %c0_68] : memref<1x320x128xbf16, #tpu.memory_space<vmem>>, vector<1x320x128xbf16>
    %71 = vector.shape_cast %70 : vector<1x320x128xbf16> to vector<320x128xbf16>
    %72 = vector.shape_cast %69 : vector<320x128xbf16> to vector<1x320x128xbf16>
    tpu.vector_store %arg5[%c0_66, %c0_67, %c0_68], %72 {strides = array<i32>} : memref<1x320x128xbf16, #tpu.memory_space<vmem>>, vector<1x320x128xbf16>,
    %c0_69 = arith.constant 0 : index
    %c0_70 = arith.constant 0 : index
    %73 = vector.load %arg4[%c0_69, %c0_70] : memref<8x320xf32, #tpu.memory_space<vmem>>, vector<8x320xf32>
    %cst_71 = arith.constant dense<0.000000e+00> : vector<8x128xf32>
    %74 = tpu.matmul %73, %68, %cst_71 {dimension_numbers = #tpu.dot_dimension_numbers<[1], [0], [0], [1], [0, 0, 1, 1], [], []>} : vector<8x320xf32>, vector<320x128xf32>, vector<8x128xf32> -> vector<8x128xf32>
    %c0_72 = arith.constant 0 : index
    %c0_73 = arith.constant 0 : index
    %c0_74 = arith.constant 0 : index
    %75 = vector.load %arg6[%c0_72, %c0_73, %c0_74] : memref<1x8x128xf32, #tpu.memory_space<vmem>>, vector<1x8x128xf32>
    %76 = vector.shape_cast %75 : vector<1x8x128xf32> to vector<8x128xf32>
    %77 = vector.shape_cast %74 : vector<8x128xf32> to vector<1x8x128xf32>
    tpu.vector_store %arg6[%c0_72, %c0_73, %c0_74], %77 {strides = array<i32>} : memref<1x8x128xf32, #tpu.memory_space<vmem>>, vector<1x8x128xf32>,
    %78 = arith.mulf %68, %68 : vector<320x128xf32>
    %cst_75 = arith.constant dense<0.000000e+00> : vector<8x128xf32>
    %79 = tpu.matmul %73, %78, %cst_75 {dimension_numbers = #tpu.dot_dimension_numbers<[1], [0], [0], [1], [0, 0, 1, 1], [], []>} : vector<8x320xf32>, vector<320x128xf32>, vector<8x128xf32> -> vector<8x128xf32>
    %c0_76 = arith.constant 0 : index
    %c0_77 = arith.constant 0 : index
    %c0_78 = arith.constant 0 : index
    %80 = vector.load %arg7[%c0_76, %c0_77, %c0_78] : memref<1x8x128xf32, #tpu.memory_space<vmem>>, vector<1x8x128xf32>
    %81 = vector.shape_cast %80 : vector<1x8x128xf32> to vector<8x128xf32>
    %82 = vector.shape_cast %79 : vector<8x128xf32> to vector<1x8x128xf32>
    tpu.vector_store %arg7[%c0_76, %c0_77, %c0_78], %82 {strides = array<i32>} : memref<1x8x128xf32, #tpu.memory_space<vmem>>, vector<1x8x128xf32>,
    return
  }
  func.func @transform_0(%arg0: i32, %arg1: i32) -> (i32, i32, i32) {
    %c0_i32 = arith.constant 0 : i32
    %c0_i32_0 = arith.constant 0 : i32
    %c0_i32_1 = arith.constant 0 : i32
    return %arg0, %c0_i32, %c0_i32_0 : i32, i32, i32
  }
  func.func @transform_1(%arg0: i32, %arg1: i32) -> (i32, i32, i32) {
    %c0_i32 = arith.constant 0 : i32
    %c0_i32_0 = arith.constant 0 : i32
    %c0_i32_1 = arith.constant 0 : i32
    return %c0_i32, %c0_i32_0, %arg1 : i32, i32, i32
  }
  func.func @transform_2(%arg0: i32, %arg1: i32) -> (i32, i32) {
    %c0_i32 = arith.constant 0 : i32
    %c0_i32_0 = arith.constant 0 : i32
    %c0_i32_1 = arith.constant 0 : i32
    return %c0_i32, %c0_i32_0 : i32, i32
  }
  func.func @transform_3(%arg0: i32, %arg1: i32) -> (i32, i32, i32) {
    %c0_i32 = arith.constant 0 : i32
    %c0_i32_0 = arith.constant 0 : i32
    return %arg0, %c0_i32, %arg1 : i32, i32, i32
  }
  func.func @transform_4(%arg0: i32, %arg1: i32) -> (i32, i32, i32) {
    %c0_i32 = arith.constant 0 : i32
    %c0_i32_0 = arith.constant 0 : i32
    return %arg0, %c0_i32, %arg1 : i32, i32, i32
  }
  func.func @transform_5(%arg0: i32, %arg1: i32) -> (i32, i32, i32) {
    %c0_i32 = arith.constant 0 : i32
    %c0_i32_0 = arith.constant 0 : i32
    return %arg0, %c0_i32, %arg1 : i32, i32, i32
  }
}

</mosaic_0001>

<bundles_post_ra>
// kernel: tpu_custom_call.1
= control target key start
LH: loop header
LB: loop body
LE: loop exit
PB: predicated region body
PF: predicated region fallthrough
CT: control target
= control target key end

     0   :  { %11 = vsyncpa [#allocation4], 0  ;;  %s8488_s0 = inlined_call_operand.hbm [shape: bf16[2,408,128], index: 0, kind: input, shape index: {}]   ;;  %s8489_s1 = inlined_call_operand.hbm [shape: bf16[9,128,128], index: 1, kind: input, shape index: {}]   ;;  %s8490_s2 = inlined_call_operand.hbm [shape: f32[8,320], index: 2, kind: input, shape index: {}]   ;;  %s8491_s3 = inlined_call_operand.hbm [shape: bf16[2,320,128], index: 3, kind: output, shape index: {0}]   ;;  %s8492_s4 = inlined_call_operand.hbm [shape: f32[2,8,128], index: 4, kind: output, shape index: {1}]   ;;  %s8493_s5 = inlined_call_operand.hbm [shape: f32[2,8,128], index: 5, kind: output, shape index: {2}]  }
   0x1   :  { %13 = vsyncpa [#allocation4 + $0x1], 0 }
   0x2   :  { %14 = vsyncpa [#allocation7], 0 }
   0x3   :  { %15 = vsyncpa [#allocation5], 0 }
   0x4   :  { %17 = vsyncpa [#allocation5 + $0x1], 0 }
   0x5   :  { %18 = vsyncpa [#allocation11], 0 }
   0x6   :  { %20 = vsyncpa [#allocation11 + $0x1], 0  ;;  %s7089_s18 = smov 0   ;;  %s7091_s19 = smov 0  }
   0x7   :  { %s7093_s20 = smov 0   ;;  %s7095_s21 = smov 0  }
   0x8   :  { %s7097_s22 = smov 0   ;;  %s7099_s23 = smov 0  }
   0x9 LB: > { %s7120_s24 = sadd.s32 4294967295, %s7043_s23   ;;  %s8495_s25 = sadd.s32 4294967294, %s7043_s23   ;;  %s7043_s23 = sphi %s7099_s23, %s26_s23   ;;  %s7039_s22 = sphi %s7097_s22, %s8564_s22   ;;  %s7035_s21 = sphi %s7095_s21, %s8563_s21   ;;  %s7031_s20 = sphi %s7093_s20, %s8562_s20   ;;  %s7027_s19 = sphi %s7091_s19, %s8561_s19   ;;  %s7023_s18 = sphi %s7089_s18, %s8560_s18  }
   0xa   : > { %p58_p0 = scmp.ne.s32.totalorder %s7027_s19, %s7023_s18  ;;  %p8494_p1 = scmp.eq.s32.totalorder %s7120_s24, 0 }
   0xb   : > { %p137_p3 = scmp.eq.s32.totalorder %s8495_s25, 1  ;;  %p5005_p5 = scmp.ge.s32.totalorder %s7043_s23, 1 }
   0xc   : > { %p7131_p4 = por %p8494_p1, %p58_p0  ;;  %p200_p7 = scmp.lt.s32.totalorder %s7043_s23, 3 }
   0xd   : > { %p7136_p6 = por %p137_p3, %p58_p0  ;;  %s7045_s29 = smov [#allocation6]  }
   0xe   : > { %s8513_s26 = scalar_select %p7131_p4, 1, 0 }
   0xf   : > { %s8514_s27 = scalar_select %p7136_p6, 1, 0 }
  0x10   : > { %p7141_p8 = pnand %p5005_p5, %p200_p7  ;;  %s214_s30 = sshll.u32 %s7045_s29, 4  ;;  %s7145_s30 = int_to_ptr.vmem [resolvable:$true] %s214_s30 }
  0x11   : > { %s7046_s7 = smov [#allocation8]   ;;  %s6811_s11 = scalar_lea.hbm %s8489_s1, 9216 }
  0x12   : > { %p6654_p9 = pneg %p7141_p8  ;;  %s228_s8 = sshll.u32 %s7046_s7, 4  ;;  %s7156_s8 = int_to_ptr.vmem [resolvable:$true] %s228_s8 }
  0x13   : > { %p6812_p12 = scmp.ne.s32.totalorder %s8489_s1, %s6811_s11  ;;  %p6818_p5 = scmp.lt.u32.totalorder %s6811_s11, %s8489_s1 }
  0x14   : > { %p7152_p11 = pnand %p6654_p9, %p8494_p1 }
  0x16   : > { %p6813_p13 = pneg %p7152_p11 }
  0x18   : > { %p6814_p0 = pnand %p6813_p13, %p6812_p12 }
  0x1a   : > { %p6815_p3 = pneg %p6814_p0 }
  0x1c   : > { %p6820_p7 = pnand %p6818_p5, %p6815_p3 }
  0x1e   : > { %6823 = shalt.err (!%p6820_p7)
}
  0x1f   : > { %s6824_s16 = scalar_lea.vmem %s7145_s30, 9216  ;;  %p6832_p2 = scmp.lt.s32.totalorder %s7145_s30, %s7145_s30 }
  0x20   : > { %p6825_p9 = scmp.ne.s32.totalorder %s7145_s30, %s6824_s16  ;;  %p6833_p12 = scmp.lt.s32.totalorder %s6824_s16, %s6824_s16 }
  0x22   : > { %p6827_p10 = pnand %p6825_p9, %p6813_p13  ;;  %p6834_p0 = por %p6833_p12, %p6832_p2 }
  0x24   : > { %p6828_p1 = pneg %p6827_p10 }
  0x26   : > { %p6835_p6 = pnand %p6834_p0, %p6828_p1 }
  0x28   : > { %6838 = shalt.err (!%p6835_p6)
}
  0x29   : > { %s8496_s17 = smov 64   ;;  %s8497_s29 = smov 4  }
  0x2a   : > { %6657 = dma.hbm_to_vmem [thread:$0]  (!%p7152_p11), %s8489_s1, 9216, %s7145_s30, [#allocation7], %s8496_s17, %s8496_s17, %s8497_s29  }
  0x2b   : > { %s6839_s12 = scalar_lea.hbm %s8490_s2, 384 }
  0x2c   : > { %p6840_p1 = scmp.ne.s32.totalorder %s8490_s2, %s6839_s12  ;;  %p6846_p10 = scmp.lt.u32.totalorder %s6839_s12, %s8490_s2 }
  0x2e   : > { %p6842_p2 = pnand %p6840_p1, %p6813_p13 }
  0x30   : > { %p6843_p6 = pneg %p6842_p2 }
  0x32   : > { %p6848_p3 = pnand %p6846_p10, %p6843_p6 }
  0x34   : > { %6851 = shalt.err (!%p6848_p3)
}
  0x35   : > { %s6852_s30 = scalar_lea.vmem %s7156_s8, 384  ;;  %p6860_p12 = scmp.lt.s32.totalorder %s7156_s8, %s7156_s8 }
  0x36   : > { %p6853_p5 = scmp.ne.s32.totalorder %s7156_s8, %s6852_s30  ;;  %p6861_p0 = scmp.lt.s32.totalorder %s6852_s30, %s6852_s30 }
  0x38   : > { %p6855_p7 = pnand %p6853_p5, %p6813_p13  ;;  %p6862_p1 = por %p6861_p0, %p6860_p12 }
  0x3a   : > { %p6856_p9 = pneg %p6855_p7 }
  0x3c   : > { %p6863_p2 = pnand %p6862_p1, %p6856_p9 }
  0x3e   : > { %6866 = shalt.err (!%p6863_p2)
}
  0x3f   : > { %6660 = dma.hbm_to_vmem [thread:$0]  (!%p7152_p11), %s8490_s2, 384, %s7156_s8, [#allocation7]  }
  0x40   : > { %s38_s10 = sadd.s32 1, %s7039_s22  ;;  %s45_s11 = sadd.s32 1, %s7031_s20 }
  0x41   : > { %p40_p13 = scmp.ge.s32.totalorder %s38_s10, 2  ;;  %p52_p6 = scmp.ne.s32.totalorder %s7031_s20, %s7027_s19 }
  0x42   : > { %p53_p10 = scmp.eq.s32.totalorder %s7043_s23, 0  ;;  %p6677_p3 = scmp.lt.s32.totalorder %s7043_s23, 2 }
  0x43   : > { %s8566_s10 = smov (%p40_p13, %s38_s10), 0  ;;  %p8517_p7 = scmp.eq.s32.totalorder %s7120_s24, 1 }
  0x44   : > { %p54_p5 = por %p53_p10, %p52_p6  ;;  %s42_s12 = ssub.s32 %s7039_s22, %s8566_s10 }
  0x45   : > { %p7223_p9 = por %p8517_p7, %p52_p6  ;;  %s239_s13 = sand.u32 1, %s7031_s20  }
  0x46   : > { %p43_p12 = scmp.eq.s32.totalorder %s42_s12, 0  ;;  %s6633_s8 = smul.u32 204, %s239_s13 }
  0x47   : > { %s8518_s6 = scalar_select %p7223_p9, 1, 0 }
  0x48   : > { %p7230_p11 = pnand %p6677_p3, %p54_p5  ;;  %s6634_s16 = smul.u32 3264, %s7039_s22 }
  0x49   : > { %s7235_s15 = scalar_select %p43_p12, %s7031_s20, %s45_s11  }
  0x4a   : > { %s243_s30 = scalar_lea.vmem [#allocation3], %s6633_s8  ;;  %s7241_s17 = scalar_lea.hbm %s8488_s0, %s6634_s16 }
  0x4b   : > { %s250_s7 = sshll.u32 %s243_s30, 4  ;;  %s7245_s12 = scalar_lea.sflag [#allocation4], %s239_s13  ;;  %s7243_s7 = int_to_ptr.vmem [resolvable:$true] %s250_s7 }
  0x4c   : > { %s6867_s29 = scalar_lea.hbm %s7241_s17, 3264  ;;  %p6869_p1 = pneg %p7230_p11 }
  0x4d   : > { %p6868_p0 = scmp.ne.s32.totalorder %s7241_s17, %s6867_s29  ;;  %s6872_s8 = scalar_lea.hbm %s8488_s0, 6528 }
  0x4e   : > { %p6873_p6 = scmp.lt.u32.totalorder %s7241_s17, %s8488_s0  ;;  %p6874_p10 = scmp.lt.u32.totalorder %s6872_s8, %s6867_s29 }
  0x4f   : > { %p6870_p2 = pnand %p6869_p1, %p6868_p0  ;;  %p6876_p5 = scmp.lt.u32.totalorder %s6867_s29, %s7241_s17 }
  0x50   : > { %p6875_p3 = por %p6874_p10, %p6873_p6 }
  0x51   : > { %p6871_p13 = pneg %p6870_p2 }
  0x52   : > { %p6877_p7 = por %p6876_p5, %p6875_p3 }
  0x54   : > { %p6878_p12 = pnand %p6877_p7, %p6871_p13 }
  0x56   : > { %6881 = shalt.err (!%p6878_p12)
}
  0x57   : > { %s6882_s13 = scalar_lea.vmem %s7243_s7, 3264  ;;  %s7049_s9 = smov [#allocation3]  }
  0x58   : > { %p6883_p0 = scmp.ne.s32.totalorder %s7243_s7, %s6882_s13  ;;  %s6887_s11 = sshll.u32 %s7049_s9, 4  ;;  %s6888_s11 = int_to_ptr.vmem [resolvable:$false] %s6887_s11 }
  0x59   : > { %s6889_s25 = scalar_lea.vmem %s6888_s11, 6528  ;;  %p6890_p4 = scmp.lt.s32.totalorder %s7243_s7, %s6888_s11 }
  0x5a   : > { %p6885_p2 = pnand %p6883_p0, %p6869_p1  ;;  %p6891_p6 = scmp.lt.s32.totalorder %s6889_s25, %s6882_s13 }
  0x5c   : > { %p6886_p9 = pneg %p6885_p2  ;;  %p6892_p10 = por %p6891_p6, %p6890_p4 }
  0x5e   : > { %p6893_p3 = pnand %p6892_p10, %p6886_p9 }
  0x60   : > { %6896 = shalt.err (!%p6893_p3)
}
  0x61   : > { %s8520_s29 = smov 4   ;;  %s8521_s8 = smov 64  }
  0x62   : > { %6664 = dma.hbm_to_vmem [thread:$0]  (!%p7230_p11), %s7241_s17, 3264, %s7243_s7, %s7245_s12, %s8521_s8, %s8521_s8, %s8520_s29  }
  0x63   : > { %262 = sbr.rel (%p7141_p8) target bundleno = 1043 (0x413), region = 32 }
  0x6a   : > { %s7279_s16 = sand.u32 1, %s7027_s19   ;;  %p8522_p4 = scmp.ne.s32.totalorder %s8513_s26, 0 }
  0x6b   : > { %s6635_s30 = smul.u32 204, %s7279_s16  ;;  %s265_s13 = scalar_lea.sflag [#allocation4], %s7279_s16 }
  0x6d   : > { %s7283_s9 = scalar_lea.vmem [#allocation3], %s6635_s30 }
  0x6e   : > { %7006 = dma.done.wait (%p8522_p4), %s265_s13, 3264  }
  0x6f   : > { %7008 = vsyncadd (%p8522_p4), %s265_s13, 4294964032  ;;  %p8523_p9 = scmp.eq.s32.totalorder %s7120_s24, 0 }
  0x71   : > { %7010 = dma.done.wait (%p8523_p9), [#allocation7], 9600   ;;  %p8524_p8 = pmov %p8523_p9 }
  0x72   : > { %v6739_v0 = vld [vmem:[#allocation6] sm:$0xff]   ;;  %v6741_v2 = vld [vmem:[#allocation6 + $0x8] sm:$0xff]   ;;  %v6743_v4 = vld [vmem:[#allocation6 + $0x10] sm:$0xff]   ;;  %v8502_v15 = vmov 0   ;;  %vm853_vm0 = vcmask 1046528   ;;  %vm1293_vm1 = vcmask 1045504  }
  0x73   : > { %7012 = vsyncadd (%p8524_p8), [#allocation7], 4294957696  ;;  %v6740_v1 = vld [vmem:[#allocation6 + $0x100] sm:$0xff]   ;;  %5683 = vmatprep.subr.bf16.mxu1 %v6739_v0  ;;  %v6742_v3 = vld [vmem:[#allocation6 + $0x108] sm:$0xff]   ;;  %s6636_s26 = smul.u32 160, %s7279_s16  ;;  %vm7052_vm2 = vmmov 0  }
  0x74   : > { %5907 = vmatprep.subr.bf16.mxu0 %v6740_v1  ;;  %5684 = vmatpush3.bf16.msra.mxu1 %v6739_v0  ;;  %v6744_v5 = vld [vmem:[#allocation6 + $0x110] sm:$0xff]   ;;  %v6745_v6 = vld [vmem:[#allocation6 + $0x18] sm:$0xff]   ;;  %v6747_v8 = vld [vmem:[#allocation6 + $0x20] sm:$0xff]   ;;  %vm4457_vm3 = vcmask 523264   ;;  %s6637_s17 = smul.u32 2560, %s7035_s21  ;;  %s4784_s25 = scalar_lea.sflag [#allocation5], %s7279_s16 }
  0x75   : > { %5908 = vmatpush3.bf16.msra.mxu0 %v6740_v1  ;;  %5685 = vmatprep.subr.bf16.mxu1 %v6741_v2  ;;  %v6746_v7 = vld [vmem:[#allocation6 + $0x118] sm:$0xff]   ;;  %v6748_v9 = vld [vmem:[#allocation6 + $0x120] sm:$0xff]   ;;  %v6749_v10 = vld [vmem:[#allocation6 + $0x28] sm:$0xff]   ;;  %s8136_s28 = scalar_lea.vmem [#allocation9], %s6636_s26  ;;  %p8556_p1 = scmp.ne.s32.totalorder %s8518_s6, 0 }
  0x76   : > { %5909 = vmatprep.subr.bf16.mxu0 %v6742_v3  ;;  %v6750_v11 = vld [vmem:[#allocation6 + $0x128] sm:$0xff]   ;;  %v321_v19 = vld [vmem:[%s7283_s9 + $0x1c] sm:$0xf]  ;;  %v324_v27 = vld [vmem:[%s7283_s9 + $0x28] sm:$0xf]  ;;  %s4808_s14 = sshll.u32 %s8136_s28, 4  ;;  %s8370_s11 = scalar_lea.hbm %s8491_s3, %s6637_s17  ;;  %s8372_s14 = int_to_ptr.vmem [resolvable:$true] %s4808_s14 }
  0x77   : > { %v314_v12 = vld [vmem:[%s7283_s9] sm:$0xf]  ;;  %v315_v13 = vld [vmem:[%s7283_s9 + $0x4] sm:$0xf]  ;;  %v319_v14 = vld [vmem:[%s7283_s9 + $0x14] sm:$0xf]  ;;  %v7306_v23 = vmax.bf16 %v8502_v15, %v321_v19  ;;  %v7327_v33 = vmax.bf16 %v8502_v15, %v324_v27 }
  0x78   : > { %5686 = vmatpush3.bf16.msra.mxu1 %v6741_v2  ;;  %v365_v16 = vmax.bf16 %v8502_v15, %v314_v12  ;;  %v366_v17 = vmax.bf16 %v8502_v15, %v315_v13  ;;  %v320_v18 = vld [vmem:[%s7283_s9 + $0x18] sm:$0xf]  ;;  %v322_v20 = vld [vmem:[%s7283_s9 + $0x20] sm:$0xf]  ;;  %v370_v21 = vmax.bf16 %v8502_v15, %v319_v14  ;;  %v323_v25 = vld [vmem:[%s7283_s9 + $0x24] sm:$0xf] }
  0x79   : > { %5910 = vmatpush3.bf16.msra.mxu0 %v6742_v3  ;;  %5687 = vmatprep.subr.bf16.mxu1 %v6743_v4  ;;  %v7303_v22 = vmax.bf16 %v8502_v15, %v320_v18  ;;  %v7309_v24 = vmax.bf16 %v8502_v15, %v322_v20  ;;  %v7316_v28 = vmax.bf16 %v8502_v15, %v323_v25  ;;  %v325_v29 = vld [vmem:[%s7283_s9 + $0x2c] sm:$0xf]  ;;  %v326_v34 = vld [vmem:[%s7283_s9 + $0x30] sm:$0xf]  ;;  %v316_v41 = vld [vmem:[%s7283_s9 + $0x8] sm:$0xf] }
  0x7a   : > { %5911 = vmatprep.subr.bf16.mxu0 %v6744_v5  ;;  %v7312_v26 = vcombine.low %v365_v16, %v366_v17  ;;  %v6751_v30 = vld [vmem:[#allocation6 + $0x30] sm:$0xff]   ;;  %v7332_v36 = vmax.bf16 %v8502_v15, %v325_v29  ;;  %v7337_v39 = vmax.bf16 %v8502_v15, %v326_v34  ;;  %v6753_v40 = vld [vmem:[#allocation6 + $0x38] sm:$0xff]   ;;  %v328_v48 = vld [vmem:[%s7283_s9 + $0x38] sm:$0xf]  ;;  %v367_v50 = vmax.bf16 %v8502_v15, %v316_v41  ;;  %s6897_s29 = scalar_lea.vmem %s8372_s14, 2560  ;;  %s7054_s8 = smov [#allocation9]  }
  0x7b   : > { %v7320_v31 = vcombine.low %v370_v21, %v7303_v22  ;;  %v7324_v32 = vcombine.low %v7306_v23, %v7309_v24  ;;  %v6752_v35 = vld [vmem:[#allocation6 + $0x130] sm:$0xff]   ;;  %v7344_v44 = vcombine.low %v7316_v28, %v7327_v33  ;;  %v318_v45 = vld [vmem:[%s7283_s9 + $0x10] sm:$0xf]  ;;  %v327_v47 = vld [vmem:[%s7283_s9 + $0x34] sm:$0xf]  ;;  %v7362_v56 = vmax.bf16 %v8502_v15, %v328_v48  ;;  %p6898_p11 = scmp.ne.s32.totalorder %s8372_s14, %s6897_s29  ;;  %s6901_s30 = sshll.u32 %s7054_s8, 4  ;;  %s6902_s30 = int_to_ptr.vmem [resolvable:$false] %s6901_s30 }
  0x7c   : > { %5688 = vmatpush3.bf16.msra.mxu1 %v6743_v4  ;;  %5699 = vmatprep.mubr.bf16.mxu1 %v7312_v26  ;;  %v317_v42 = vld [vmem:[%s7283_s9 + $0xc] sm:$0xf]  ;;  %v7349_v46 = vcombine.low %v7332_v36, %v7337_v39  ;;  %v6754_v49 = vld [vmem:[#allocation6 + $0x138] sm:$0xff]   ;;  %v329_v52 = vld [vmem:[%s7283_s9 + $0x3c] sm:$0xf]  ;;  %v369_v54 = vmax.bf16 %v8502_v15, %v318_v45  ;;  %v7359_v55 = vmax.bf16 %v8502_v15, %v327_v47  ;;  %s6903_s13 = scalar_lea.vmem %s6902_s30, 5120  ;;  %p6904_p7 = scmp.lt.s32.totalorder %s8372_s14, %s6902_s30 }
  0x7d   : > { %5912 = vmatpush3.bf16.msra.mxu0 %v6744_v5  ;;  %5689 = vmatprep.subr.bf16.mxu1 %v6745_v6  ;;  %v2162_v37 = vrot.slane %v7320_v31, 1  ;;  %v2163_v38 = vrot.slane %v7324_v32, 1  ;;  %v368_v51 = vmax.bf16 %v8502_v15, %v317_v42  ;;  %v330_v53 = vld [vmem:[%s7283_s9 + $0x40] sm:$0xf]  ;;  %v2165_v57 = vrot.slane %v7344_v44, 1  ;;  %v6755_v59 = vld [vmem:[#allocation6 + $0x140] sm:$0xff]   ;;  %p6899_p13 = pnand %p6898_p11, %p8556_p1  ;;  %p6905_p12 = scmp.lt.s32.totalorder %s6903_s13, %s6897_s29 }
  0x7e   : > { %5913 = vmatprep.subr.bf16.mxu0 %v6746_v7  ;;  %v2167_v58 = vrot.slane %v7349_v46, 1  ;;  %v6756_v60 = vld [vmem:[#allocation6 + $0x40] sm:$0xff]   ;;  %v7367_v61 = vmax.bf16 %v8502_v15, %v329_v52  ;;  %v7370_v62 = vmax.bf16 %v8502_v15, %v330_v53  ;;  %v7374_v0 = vcombine.low %v369_v54, %v370_v21  ;;  %v331_v2 = vld [vmem:[%s7283_s9 + $0x44] sm:$0xf]  ;;  %v332_v4 = vld [vmem:[%s7283_s9 + $0x48] sm:$0xf] }
  0x7f   : > { %v2164_v43 = vsel %vm853_vm0, %v2162_v37, %v2163_v38  ;;  %v7372_v63 = vcombine.low %v367_v50, %v368_v51  ;;  %v7378_v1 = vcombine.low %v7359_v55, %v7362_v56  ;;  %v2166_v3 = vsel %vm853_vm0, %v2163_v38, %v2165_v57  ;;  %v6759_v19 = vld [vmem:[#allocation6 + $0x50] sm:$0xff]   ;;  %v335_v21 = vld [vmem:[%s7283_s9 + $0x54] sm:$0xf]  ;;  %v336_v25 = vld [vmem:[%s7283_s9 + $0x58] sm:$0xf]  ;;  %p6900_p5 = pneg %p6899_p13  ;;  %p6906_p0 = por %p6905_p12, %p6904_p7 }
  0x80   : > { %5690 = vmatpush3.bf16.msra.mxu1 %v6745_v6  ;;  %5923 = vmatprep.mubr.bf16.mxu0 %v2164_v43  ;;  %v2168_v5 = vsel %vm853_vm0, %v2165_v57, %v2167_v58  ;;  %v7386_v6 = vcombine.low %v7367_v61, %v7370_v62  ;;  %v7394_v12 = vmax.bf16 %v8502_v15, %v331_v2  ;;  %v338_v34 = vld [vmem:[%s7283_s9 + $0x60] sm:$0xf]  ;;  %v857_v45 = vrot.slane %v7374_v0, 1  ;;  %v6763_v48 = vld [vmem:[#allocation6 + $0x60] sm:$0xff]   ;;  %v339_v50 = vld [vmem:[%s7283_s9 + $0x64] sm:$0xf] }
  0x81   : > { %5914 = vmatpush3.bf16.msra.mxu0 %v6746_v7  ;;  %5691 = vmatprep.subr.bf16.mxu1 %v6747_v8  ;;  %v333_v7 = vld [vmem:[%s7283_s9 + $0x4c] sm:$0xf]  ;;  %v7397_v13 = vmax.bf16 %v8502_v15, %v332_v4  ;;  %v7408_v18 = vcombine.low %v7303_v22, %v7306_v23  ;;  %v7412_v20 = vcombine.low %v7309_v24, %v7316_v28  ;;  %v6761_v22 = vld [vmem:[#allocation6 + $0x58] sm:$0xff]   ;;  %p6907_p2 = pnand %p6906_p0, %p6900_p5 }
  0x82   : > { %5915 = vmatprep.subr.bf16.mxu0 %v6748_v9  ;;  %v2171_v14 = vrot.slane %v7386_v6, 1  ;;  %v7401_v16 = vmax.bf16 %v8502_v15, %v333_v7  ;;  %v6762_v24 = vld [vmem:[#allocation6 + $0x158] sm:$0xff]   ;;  %v7432_v38 = vmax.bf16 %v8502_v15, %v335_v21  ;;  %v7442_v43 = vmax.bf16 %v8502_v15, %v338_v34  ;;  %v341_v54 = vld [vmem:[%s7283_s9 + $0x6c] sm:$0xf]  ;;  %v344_v34 = vld [vmem:[%s7283_s9 + $0x78] sm:$0xf] }
  0x83   : > { %v7419_v29 = vcombine.low %v7394_v12, %v7397_v13  ;;  %v7447_v47 = vcombine.low %v7327_v33, %v7332_v36  ;;  %v340_v51 = vld [vmem:[%s7283_s9 + $0x68] sm:$0xf]  ;;  %v342_v57 = vld [vmem:[%s7283_s9 + $0x70] sm:$0xf] }
  0x84   : > { %5692 = vmatpush3.bf16.msra.mxu1 %v6747_v8  ;;  %v334_v8 = vld [vmem:[%s7283_s9 + $0x50] sm:$0xf]  ;;  %v7482_v7 = vmax.bf16 %v8502_v15, %v340_v51  ;;  %v6767_v21 = vld [vmem:[#allocation6 + $0x70] sm:$0xff]  }
  0x85   : > { %5916 = vmatpush3.bf16.msra.mxu0 %v6748_v9  ;;  %5693 = vmatprep.subr.bf16.mxu1 %v6749_v10  ;;  %v6757_v9 = vld [vmem:[#allocation6 + $0x48] sm:$0xff]   ;;  %v7404_v17 = vmax.bf16 %v8502_v15, %v334_v8  ;;  %v2173_v28 = vrot.slane %v7419_v29, 1  ;;  %v859_v8 = vrot.slane %v7408_v18, 1 }
  0x86   : > { %5917 = vmatprep.subr.bf16.mxu0 %v6750_v11 }
  0x87   : > { %v7426_v37 = vcombine.low %v7401_v16, %v7404_v17  ;;  %v2174_v52 = vsel %vm853_vm0, %v2171_v14, %v2173_v28 }
  0x88   : > { %5694 = vmatpush3.bf16.msra.mxu1 %v6749_v10  ;;  %v6758_v10 = vld [vmem:[#allocation6 + $0x148] sm:$0xff]  }
  0x89   : > { %5918 = vmatpush3.bf16.msra.mxu0 %v6750_v11  ;;  %5695 = vmatprep.subr.bf16.mxu1 %v6751_v30  ;;  %v2169_v11 = vrot.slane %v7378_v1, 1  ;;  %v2175_v41 = vrot.slane %v7426_v37, 1 }
  0x8a   : > { %5919 = vmatprep.subr.bf16.mxu0 %v6752_v35 }
  0x8b   : > { %v2170_v27 = vsel %vm853_vm0, %v2167_v58, %v2169_v11  ;;  %v2172_v23 = vsel %vm853_vm0, %v2169_v11, %v2171_v14  ;;  %v6764_v58 = vld [vmem:[#allocation6 + $0x160] sm:$0xff]   ;;  %v2176_v33 = vsel %vm853_vm0, %v2173_v28, %v2175_v41  ;;  %v7490_v11 = vmax.bf16 %v8502_v15, %v342_v57 }
  0x8c   : > { %5696 = vmatpush3.bf16.msra.mxu1 %v6751_v30  ;;  %v337_v30 = vld [vmem:[%s7283_s9 + $0x5c] sm:$0xf]  ;;  %v8501_v14 = vrot.slane %v7412_v20, 1  ;;  %v7541_v57 = vcombine.low %v7397_v13, %v7401_v16 }
  0x8d   : > { %5920 = vmatpush3.bf16.msra.mxu0 %v6752_v35  ;;  %5697 = vmatprep.subr.bf16.mxu1 %v6753_v40  ;;  %v6760_v35 = vld [vmem:[#allocation6 + $0x150] sm:$0xff]   ;;  %v7439_v42 = vmax.bf16 %v8502_v15, %v337_v30  ;;  %v343_v30 = vld [vmem:[%s7283_s9 + $0x74] sm:$0xf] }
  0x8e   : > { %5921 = vmatprep.subr.bf16.mxu0 %v6754_v49 }
  0x8f   : > { %v7465_v36 = vcombine.low %v7439_v42, %v7442_v43 }
  0x90   : > { %5698 = vmatpush3.bf16.msra.mxu1 %v6753_v40  ;;  %v7435_v40 = vmax.bf16 %v8502_v15, %v336_v25  ;;  %v7498_v25 = vsel %vm853_vm0, %v857_v45, %v859_v8 }
  0x91   : > { %5922 = vmatpush3.bf16.msra.mxu0 %v6754_v49  ;;  %5739 = vmatprep.subr.bf16.mxu1 %v6756_v60  ;;  %v7451_v49 = vcombine.low %v7337_v39, %v7359_v55  ;;  %8525 = vst [vmem:[#allocation17_spill] sm:$0xff] %v7465_v36  ;;  %v6765_v39 = vld [vmem:[#allocation6 + $0x68] sm:$0xff]   ;;  %v854_v55 = vrot.slane %v7312_v26, 1 }
  0x92   : > { %5963 = vmatprep.subr.bf16.mxu0 %v6755_v59  ;;  %v7458_v53 = vcombine.low %v7432_v38, %v7435_v40 }
  0x93   : > { %5700 = vmatmul.mubr.bf16.vlgmr.msra.gmra.mrb[0].mxu1 %v7372_v63 }
  0x94   : > { %5924 = vmatmul.mubr.bf16.vlgmr.msra.gmra.mrb[0].mxu0 %v2166_v3  ;;  %5703 = vmatprep.mubr.bf16.mxu1 %v7374_v0  ;;  %v2177_v4 = vrot.slane %v7458_v53, 1 }
  0x95   : > { %5927 = vmatprep.mubr.bf16.mxu0 %v2168_v5  ;;  %5964 = vmatpush3.bf16.msra.mxu0 %v6755_v59  ;;  %v855_v59 = vrot.slane %v7372_v63, 1  ;;  %v7479_v5 = vmax.bf16 %v8502_v15, %v339_v50  ;;  %v7530_v50 = vmax.bf16 %v8502_v15, %v344_v34 }
  0x96   : > { %5740 = vmatpush3.bf16.msra.mxu1 %v6756_v60  ;;  %5965 = vmatprep.subr.bf16.mxu0 %v6758_v10  ;;  %v6766_v60 = vld [vmem:[#allocation6 + $0x168] sm:$0xff]  }
  0x97   : > { %5741 = vmatprep.subr.bf16.mxu1 %v6757_v9  ;;  %v7472_v2 = vsel %vm853_vm0, %v854_v55, %v855_v59  ;;  %v7475_v3 = vsel %vm853_vm0, %v855_v59, %v857_v45  ;;  %v348_v55 = vld [vmem:[%s7283_s9 + $0x88] sm:$0xf] }
  0x99   : > { %5966 = vmatpush3.bf16.msra.mxu0 %v6758_v10  ;;  %v7487_v10 = vmax.bf16 %v8502_v15, %v341_v54 }
  0x9a   : > { %5742 = vmatpush3.bf16.msra.mxu1 %v6757_v9  ;;  %5967 = vmatprep.subr.bf16.mxu0 %v6760_v35  ;;  %v2179_v9 = vrot.slane %v7465_v36, 1 }
  0x9b   : > { %5704 = vmatmul.mubr.bf16.gmra.mrb[4].mxu1 %v7408_v18  ;;  %5743 = vmatprep.subr.bf16.mxu1 %v6759_v19 }
  0x9c   : > { %5928 = vmatmul.mubr.bf16.gmra.mrb[4].mxu0 %v2170_v27  ;;  %5707 = vmatprep.mubr.bf16.mxu1 %v7412_v20  ;;  %v7502_v27 = vcombine.low %v7370_v62, %v7394_v12  ;;  %v2180_v28 = vsel %vm853_vm0, %v2177_v4, %v2179_v9  ;;  %v7521_v62 = vcombine.low %v7487_v10, %v7490_v11  ;;  %v6769_v12 = vld [vmem:[#allocation6 + $0x78] sm:$0xff]  }
  0x9d   : > { %5931 = vmatprep.mubr.bf16.mxu0 %v2172_v23  ;;  %5968 = vmatpush3.bf16.msra.mxu0 %v6760_v35  ;;  %v7509_v35 = vsel %vm853_vm0, %v859_v8, %v8501_v14  ;;  %v346_v23 = vld [vmem:[%s7283_s9 + $0x80] sm:$0xf]  ;;  %v7557_v8 = vld [vmem:[#allocation6 + $0x80] sm:$0xff]  }
  0x9e   : > { %5744 = vmatpush3.bf16.msra.mxu1 %v6759_v19  ;;  %5969 = vmatprep.subr.bf16.mxu0 %v6762_v24  ;;  %v7495_v19 = vcombine.low %v7362_v56, %v7367_v61  ;;  %v2178_v56 = vsel %vm853_vm0, %v2175_v41, %v2177_v4  ;;  %v7514_v61 = vcombine.low %v7479_v5, %v7482_v7  ;;  %v6770_v41 = vld [vmem:[#allocation6 + $0x178] sm:$0xff]   ;;  %v2183_v51 = vrot.slane %v7521_v62, 1  ;;  %v349_v4 = vld [vmem:[%s7283_s9 + $0x8c] sm:$0xf] }
  0x9f   : > { %5745 = vmatprep.subr.bf16.mxu1 %v6761_v22  ;;  %v7537_v54 = vmax.bf16 %v8502_v15, %v346_v23  ;;  %v7584_v23 = vcombine.low %v7435_v40, %v7439_v42 }
  0xa0   : > { %v2181_v45 = vrot.slane %v7514_v61, 1 }
  0xa1   : > { %5970 = vmatpush3.bf16.msra.mxu0 %v6762_v24  ;;  %v6768_v24 = vld [vmem:[#allocation6 + $0x170] sm:$0xff]  }
  0xa2   : > { %5746 = vmatpush3.bf16.msra.mxu1 %v6761_v22  ;;  %5971 = vmatprep.subr.bf16.mxu0 %v6764_v58  ;;  %v345_v22 = vld [vmem:[%s7283_s9 + $0x7c] sm:$0xf]  ;;  %v2182_v59 = vsel %vm853_vm0, %v2179_v9, %v2181_v45  ;;  %v2184_v13 = vsel %vm853_vm0, %v2181_v45, %v2183_v51  ;;  %v7571_v9 = vmax.bf16 %v8502_v15, %v348_v55  ;;  %v1295_v55 = vrot.slane %v7372_v63, 2 }
  0xa3   : > { %5708 = vmatmul.mubr.bf16.gmra.mrb[8].mxu1 %v7447_v47  ;;  %5747 = vmatprep.subr.bf16.mxu1 %v6763_v48  ;;  %v353_v45 = vld [vmem:[%s7283_s9 + $0x9c] sm:$0xf] }
  0xa4   : > { %5932 = vmatmul.mubr.bf16.gmra.mrb[8].mxu0 %v2174_v52  ;;  %5711 = vmatprep.mubr.bf16.mxu1 %v7451_v49  ;;  %v7534_v52 = vmax.bf16 %v8502_v15, %v345_v22 }
  0xa5   : > { %5935 = vmatprep.mubr.bf16.mxu0 %v2176_v33  ;;  %5972 = vmatpush3.bf16.msra.mxu0 %v6764_v58  ;;  %v347_v58 = vld [vmem:[%s7283_s9 + $0x84] sm:$0xf]  ;;  %v7544_v33 = vld [vmem:[#allocation6 + $0x180] sm:$0xff]  }
  0xa6   : > { %5748 = vmatpush3.bf16.msra.mxu1 %v6763_v48  ;;  %5973 = vmatprep.subr.bf16.mxu0 %v6766_v60  ;;  %v7527_v48 = vmax.bf16 %v8502_v15, %v343_v30  ;;  %v7562_v16 = vcombine.low %v7534_v52, %v7537_v54  ;;  %v7574_v30 = vmax.bf16 %v8502_v15, %v349_v4 }
  0xa7   : > { %5749 = vmatprep.subr.bf16.mxu1 %v6765_v39 }
  0xa8   : > { %8527 = vst [vmem:[#allocation19_spill] sm:$0xff] %v7562_v16  ;;  %v2187_v22 = vrot.slane %v7562_v16, 1 }
  0xa9   : > { %5974 = vmatpush3.bf16.msra.mxu0 %v6766_v60  ;;  %v7554_v60 = vcombine.low %v7527_v48, %v7530_v50 }
  0xaa   : > { %5750 = vmatpush3.bf16.msra.mxu1 %v6765_v39  ;;  %5975 = vmatprep.subr.bf16.mxu0 %v6768_v24  ;;  %v7548_v39 = vcombine.low %v7404_v17, %v7432_v38  ;;  %v398_v17 = vmax.bf16 %v8502_v15, %v347_v58  ;;  %v354_v58 = vld [vmem:[%s7283_s9 + $0xa0] sm:$0xf] }
  0xab   : > { %5712 = vmatmul.mubr.bf16.gmra.mrb[12].mxu1 %v7495_v19  ;;  %5751 = vmatprep.subr.bf16.mxu1 %v6767_v21  ;;  %8526 = vst [vmem:[#allocation18_spill] sm:$0xff] %v7554_v60  ;;  %v2185_v38 = vrot.slane %v7554_v60, 1 }
  0xac   : > { %5936 = vmatmul.mubr.bf16.gmra.mrb[12].mxu0 %v2178_v56  ;;  %5715 = vmatprep.mubr.bf16.mxu1 %v7502_v27  ;;  %v1297_v56 = vrot.slane %v7374_v0, 2  ;;  %v1299_v0 = vrot.slane %v7408_v18, 2  ;;  %v7599_v40 = vcombine.low %v398_v17, %v7571_v9 }
  0xad   : > { %5939 = vmatprep.mubr.bf16.mxu0 %v2180_v28  ;;  %5976 = vmatpush3.bf16.msra.mxu0 %v6768_v24  ;;  %v351_v24 = vld [vmem:[%s7283_s9 + $0x94] sm:$0xf]  ;;  %v352_v28 = vld [vmem:[%s7283_s9 + $0x98] sm:$0xf] }
  0xae   : > { %5752 = vmatpush3.bf16.msra.mxu1 %v6767_v21  ;;  %5977 = vmatprep.subr.bf16.mxu0 %v6770_v41  ;;  %v350_v21 = vld [vmem:[%s7283_s9 + $0x90] sm:$0xf]  ;;  %8528 = vst [vmem:[#allocation20_spill] sm:$0xff] %v7599_v40  ;;  %v7611_v63 = vsel %vm1293_vm1, %v1295_v55, %v1297_v56  ;;  %v7614_v18 = vsel %vm1293_vm1, %v1297_v56, %v1299_v0 }
  0xaf   : > { %5753 = vmatprep.subr.bf16.mxu1 %v6769_v12  ;;  %v7577_v34 = vmax.bf16 %v8502_v15, %v350_v21  ;;  %v402_v4 = vmax.bf16 %v8502_v15, %v351_v24  ;;  %v2189_v21 = vrot.slane %v7599_v40, 1  ;;  %v404_v56 = vmax.bf16 %v8502_v15, %v353_v45  ;;  %v355_v24 = vld [vmem:[%s7283_s9 + $0xa4] sm:$0xf]  ;;  %v357_v45 = vld [vmem:[%s7283_s9 + $0xac] sm:$0xf] }
  0xb1   : > { %5978 = vmatpush3.bf16.msra.mxu0 %v6770_v41  ;;  %v7591_v41 = vcombine.low %v7442_v43, %v7479_v5  ;;  %v7603_v42 = vcombine.low %v7574_v30, %v7577_v34  ;;  %v2188_v43 = vsel %vm853_vm0, %v2185_v38, %v2187_v22 }
  0xb2   : > { %5754 = vmatpush3.bf16.msra.mxu1 %v6769_v12  ;;  %6019 = vmatprep.subr.bf16.mxu0 %v7544_v33  ;;  %v1294_v12 = vrot.slane %v7312_v26, 2  ;;  %v8500_v26 = vrot.slane %v7412_v20, 2 }
  0xb3   : > { %5716 = vmatmul.mubr.bf16.gmra.mrb[16].mxu1 %v7541_v57  ;;  %5795 = vmatprep.subr.bf16.mxu1 %v7557_v8  ;;  %8529 = vst [vmem:[#allocation21_spill] sm:$0xff] %v7603_v42 }
  0xb4   : > { %5940 = vmatmul.mubr.bf16.gmra.mrb[16].mxu0 %v2182_v59  ;;  %5719 = vmatprep.mubr.bf16.mxu1 %v7548_v39  ;;  %v2186_v59 = vsel %vm853_vm0, %v2183_v51, %v2185_v38  ;;  %v7608_v5 = vsel %vm1293_vm1, %v1294_v12, %v1295_v55  ;;  %v7620_v51 = vsel %vm1293_vm1, %v1299_v0, %v8500_v26  ;;  %v2191_v38 = vrot.slane %v7603_v42, 1 }
  0xb5   : > { %5943 = vmatprep.mubr.bf16.mxu0 %v2184_v13  ;;  %8530 = vst [vmem:[#allocation22_spill] sm:$0xff] %v7620_v51  ;;  %v403_v13 = vmax.bf16 %v8502_v15, %v352_v28  ;;  %v7629_v12 = vmax.bf16 %v8502_v15, %v354_v58  ;;  %v7633_v55 = vcombine.low %v7482_v7, %v7487_v10  ;;  %v356_v28 = vld [vmem:[%s7283_s9 + $0xa8] sm:$0xf]  ;;  %v358_v58 = vld [vmem:[%s7283_s9 + $0xb0] sm:$0xf] }
  0xb6   : > { %v7637_v0 = vcombine.low %v7490_v11, %v7527_v48  ;;  %v2192_v14 = vsel %vm853_vm0, %v2189_v21, %v2191_v38  ;;  %v7655_v11 = vmax.bf16 %v8502_v15, %v355_v24  ;;  %v7658_v48 = vmax.bf16 %v8502_v15, %v356_v28 }
  0xb7   : > { %v7645_v26 = vcombine.low %v404_v56, %v7629_v12 }
  0xb8   : > { %v7676_v24 = vcombine.low %v7655_v11, %v7658_v48 }
  0xb9   : > { %8532 = vst [vmem:[#allocation24_spill] sm:$0xff] %v7645_v26  ;;  %v2195_v10 = vrot.slane %v7645_v26, 1 }
  0xba   : > { %8533 = vst [vmem:[#allocation25_spill] sm:$0xff] %v7676_v24 }
  0xbb   : > { %5720 = vmatmul.mubr.bf16.gmra.mrb[20].mxu1 %v7584_v23 }
  0xbc   : > { %5944 = vmatmul.mubr.bf16.gmra.mrb[20].mxu0 %v2186_v59  ;;  %5723 = vmatprep.mubr.bf16.mxu1 %v7591_v41  ;;  %v2190_v59 = vsel %vm853_vm0, %v2187_v22, %v2189_v21  ;;  %v7661_v22 = vmax.bf16 %v8502_v15, %v357_v45  ;;  %v7664_v21 = vmax.bf16 %v8502_v15, %v358_v58  ;;  %v359_v58 = vld [vmem:[%s7283_s9 + $0xb4] sm:$0xf] }
  0xbd   : > { %5947 = vmatprep.mubr.bf16.mxu0 %v2188_v43  ;;  %v7642_v43 = vcombine.low %v402_v4, %v403_v13 }
  0xbe   : > { %v7681_v45 = vcombine.low %v7661_v22, %v7664_v21 }
  0xbf   : > { %8531 = vst [vmem:[#allocation23_spill] sm:$0xff] %v7642_v43  ;;  %v2193_v7 = vrot.slane %v7642_v43, 1 }
  0xc0   : > { %8534 = vst [vmem:[#allocation26_spill] sm:$0xff] %v7681_v45 }
  0xc1   : > { %v2194_v51 = vsel %vm853_vm0, %v2191_v38, %v2193_v7  ;;  %v2196_v28 = vsel %vm853_vm0, %v2193_v7, %v2195_v10  ;;  %v7696_v38 = vcombine.low %v7577_v34, %v402_v4  ;;  %v2602_v34 = vrot.slane %v7324_v32, 2 }
  0xc2   : > { %v7709_v4 = vcombine.low %v403_v13, %v404_v56  ;;  %v6774_v13 = vld [vmem:[#allocation6 + $0x188] sm:$0xff]  }
  0xc3   : > { %5724 = vmatmul.mubr.bf16.gmra.mrb[24].mxu1 %v7633_v55  ;;  %v6773_v56 = vld [vmem:[#allocation6 + $0x88] sm:$0xff]  }
  0xc4   : > { %5948 = vmatmul.mubr.bf16.gmra.mrb[24].mxu0 %v2190_v59  ;;  %5727 = vmatprep.mubr.bf16.mxu1 %v7637_v0  ;;  %v7668_v59 = vcombine.low %v7530_v50, %v7534_v52  ;;  %v2197_v50 = vrot.slane %v7676_v24, 1  ;;  %v7688_v52 = vmax.bf16 %v8502_v15, %v359_v58 }
  0xc5   : > { %5951 = vmatprep.mubr.bf16.mxu0 %v2192_v14  ;;  %v7671_v14 = vcombine.low %v7537_v54, %v398_v17  ;;  %v2199_v54 = vrot.slane %v7681_v45, 1  ;;  %v7693_v17 = vcombine.low %v7571_v9, %v7574_v30  ;;  %v2601_v30 = vrot.slane %v7320_v31, 2 }
  0xc6   : > { %v2198_v7 = vsel %vm853_vm0, %v2195_v10, %v2197_v50 }
  0xc7   : > { %v2603_v58 = vsel %vm1293_vm1, %v2601_v30, %v2602_v34  ;;  %v6776_v30 = vld [vmem:[#allocation6 + $0x190] sm:$0xff]  }
  0xcb   : > { %5728 = vmatmul.mubr.bf16.gmra.mrb[28].mxu1 %v7668_v59 }
  0xcc   : > { %5952 = vmatmul.mubr.bf16.gmra.mrb[28].mxu0 %v2194_v51  ;;  %5731 = vmatprep.mubr.bf16.mxu1 %v7671_v14  ;;  %v7701_v51 = vcombine.low %v7688_v52, %v7688_v52 }
  0xcd   : > { %5955 = vmatprep.mubr.bf16.mxu0 %v2196_v28  ;;  %v2200_v28 = vsel %vm853_vm0, %v2197_v50, %v2199_v54  ;;  %v2604_v50 = vrot.slane %v7344_v44, 2 }
  0xce   : > { %v2201_v9 = vrot.slane %v7701_v51, 1 }
  0xd0   : > { %v2202_v10 = vsel %vm853_vm0, %v2199_v54, %v2201_v9  ;;  %v2608_v54 = vrot.slane %v7378_v1, 2  ;;  %v2610_v9 = vrot.slane %v7386_v6, 2 }
  0xd3   : > { %5732 = vmatmul.mubr.bf16.gmra.mrb[32].mxu1 %v7693_v17 }
  0xd4   : > { %5956 = vmatmul.mubr.bf16.gmra.mrb[32].mxu0 %v2198_v7  ;;  %5735 = vmatprep.mubr.bf16.mxu1 %v7696_v38  ;;  %v2606_v7 = vrot.slane %v7349_v46, 2 }
  0xd5   : > { %5959 = vmatprep.mubr.bf16.mxu0 %v2200_v28  ;;  %v2605_v28 = vsel %vm1293_vm1, %v2602_v34, %v2604_v50  ;;  %v6775_v34 = vld [vmem:[#allocation6 + $0x90] sm:$0xff]  }
  0xd6   : > { %v2607_v15 = vsel %vm1293_vm1, %v2604_v50, %v2606_v7  ;;  %v2612_v50 = vrot.slane %v7419_v29, 2 }
  0xdb   : > { %5736 = vmatmul.mubr.bf16.gmra.mrb[36].mxu1 %v7709_v4 }
  0xdc   : > { %5960 = vmatmul.mubr.bf16.gmra.mrb[36].mxu0 %v2202_v10  ;;  %5755 = vmatprep.mubr.bf16.mxu1 %v7472_v2  ;;  %v863_v2 = vrot.slane %v7447_v47, 1  ;;  %v8535_v10 = vrot.slane %v7412_v20, 1 }
  0xdd   : > { %5979 = vmatprep.mubr.bf16.mxu0 %v2603_v58  ;;  %v865_v58 = vrot.slane %v7451_v49, 1 }
  0xe3   : > { %5756 = vmatmul.mubr.bf16.vlgmr.msra.gmra.mrb[0].mxu1 %v7475_v3  ;;  %v2609_v3 = vsel %vm1293_vm1, %v2606_v7, %v2608_v54  ;;  %v867_v7 = vrot.slane %v7495_v19, 1 }
  0xe4   : > { %5980 = vmatmul.mubr.bf16.vlgmr.msra.gmra.mrb[0].mxu0 %v2605_v28  ;;  %5759 = vmatprep.mubr.bf16.mxu1 %v7498_v25  ;;  %v2611_v25 = vsel %vm1293_vm1, %v2608_v54, %v2610_v9  ;;  %v2614_v28 = vrot.slane %v7426_v37, 2  ;;  %v2613_v54 = vsel %vm1293_vm1, %v2610_v9, %v2612_v50  ;;  %v2616_v9 = vrot.slane %v7458_v53, 2 }
  0xe5   : > { %5983 = vmatprep.mubr.bf16.mxu0 %v2607_v15  ;;  %6020 = vmatpush3.bf16.msra.mxu0 %v7544_v33  ;;  %v864_v15 = vsel %vm853_vm0, %v8535_v10, %v863_v2  ;;  %v6778_v33 = vld [vmem:[#allocation6 + $0x198] sm:$0xff]  }
  0xe6   : > { %5796 = vmatpush3.bf16.msra.mxu1 %v7557_v8  ;;  %6021 = vmatprep.subr.bf16.mxu0 %v6774_v13  ;;  %v6777_v8 = vld [vmem:[#allocation6 + $0x98] sm:$0xff]   ;;  %v2615_v10 = vsel %vm1293_vm1, %v2612_v50, %v2614_v28  ;;  %v2617_v50 = vsel %vm1293_vm1, %v2614_v28, %v2616_v9  ;;  %v2620_v28 = vrot.slane %v7514_v61, 2 }
  0xe7   : > { %5797 = vmatprep.subr.bf16.mxu1 %v6773_v56 }
  0xe9   : > { %6022 = vmatpush3.bf16.msra.mxu0 %v6774_v13  ;;  %v6780_v13 = vld [vmem:[#allocation6 + $0x1a0] sm:$0xff]  }
  0xea   : > { %5798 = vmatpush3.bf16.msra.mxu1 %v6773_v56  ;;  %6023 = vmatprep.subr.bf16.mxu0 %v6776_v30  ;;  %v6779_v56 = vld [vmem:[#allocation6 + $0xa0] sm:$0xff]  }
  0xeb   : > { %5760 = vmatmul.mubr.bf16.gmra.mrb[4].mxu1 %v7509_v35  ;;  %5799 = vmatprep.subr.bf16.mxu1 %v6775_v34  ;;  %v7737_v35 = vsel %vm853_vm0, %v863_v2, %v865_v58  ;;  %v869_v2 = vrot.slane %v7502_v27, 1 }
  0xec   : > { %5984 = vmatmul.mubr.bf16.gmra.mrb[4].mxu0 %v2609_v3  ;;  %5763 = vmatprep.mubr.bf16.mxu1 %v864_v15  ;;  %v7741_v3 = vsel %vm853_vm0, %v865_v58, %v867_v7  ;;  %v871_v15 = vrot.slane %v7541_v57, 1 }
  0xed   : > { %5987 = vmatprep.mubr.bf16.mxu0 %v2611_v25  ;;  %6024 = vmatpush3.bf16.msra.mxu0 %v6776_v30  ;;  %v6782_v30 = vld [vmem:[#allocation6 + $0x1a8] sm:$0xff]   ;;  %v2618_v25 = vrot.slane %v7465_v36, 2  ;;  %v7751_v58 = vsel %vm853_vm0, %v867_v7, %v869_v2  ;;  %v873_v7 = vrot.slane %v7548_v39, 1 }
  0xee   : > { %5800 = vmatpush3.bf16.msra.mxu1 %v6775_v34  ;;  %6025 = vmatprep.subr.bf16.mxu0 %v6778_v33  ;;  %v6781_v34 = vld [vmem:[#allocation6 + $0xa8] sm:$0xff]  }
  0xef   : > { %5801 = vmatprep.subr.bf16.mxu1 %v6777_v8  ;;  %v2621_v36 = vsel %vm1293_vm1, %v2618_v25, %v2620_v28 }
  0xf1   : > { %6026 = vmatpush3.bf16.msra.mxu0 %v6778_v33  ;;  %v6784_v33 = vld [vmem:[#allocation6 + $0x1b0] sm:$0xff]  }
  0xf2   : > { %5802 = vmatpush3.bf16.msra.mxu1 %v6777_v8  ;;  %6027 = vmatprep.subr.bf16.mxu0 %v6780_v13  ;;  %v6783_v8 = vld [vmem:[#allocation6 + $0xb0] sm:$0xff]  }
  0xf3   : > { %5764 = vmatmul.mubr.bf16.gmra.mrb[8].mxu1 %v7737_v35  ;;  %5803 = vmatprep.subr.bf16.mxu1 %v6779_v56 }
  0xf4   : > { %5988 = vmatmul.mubr.bf16.gmra.mrb[8].mxu0 %v2613_v54  ;;  %5767 = vmatprep.mubr.bf16.mxu1 %v7741_v3  ;;  %v7755_v54 = vsel %vm853_vm0, %v869_v2, %v871_v15  ;;  %v875_v2 = vrot.slane %v7584_v23, 1 }
  0xf5   : > { %5991 = vmatprep.mubr.bf16.mxu0 %v2615_v10  ;;  %6028 = vmatpush3.bf16.msra.mxu0 %v6780_v13  ;;  %v2619_v10 = vsel %vm1293_vm1, %v2616_v9, %v2618_v25  ;;  %v6786_v13 = vld [vmem:[#allocation6 + $0x1b8] sm:$0xff]   ;;  %v7766_v9 = vld [vmem:[#allocation6 + $0xc0] sm:$0xff]   ;;  %v2624_v25 = vrot.slane %v7554_v60, 2  ;;  %v2630_v60 = vrot.slane %v7603_v42, 2  ;;  %v2632_v42 = vrot.slane %v7642_v43, 2 }
  0xf6   : > { %5804 = vmatpush3.bf16.msra.mxu1 %v6779_v56  ;;  %6029 = vmatprep.subr.bf16.mxu0 %v6782_v30  ;;  %v6785_v56 = vld [vmem:[#allocation6 + $0xb8] sm:$0xff]  }
  0xf7   : > { %5805 = vmatprep.subr.bf16.mxu1 %v6781_v34 }
  0xf9   : > { %6030 = vmatpush3.bf16.msra.mxu0 %v6782_v30  ;;  %v2622_v30 = vrot.slane %v7521_v62, 2 }
  0xfa   : > { %5806 = vmatpush3.bf16.msra.mxu1 %v6781_v34  ;;  %6031 = vmatprep.subr.bf16.mxu0 %v6784_v33  ;;  %v7764_v34 = vld [vmem:[#allocation6 + $0x1c0] sm:$0xff]  }
  0xfb   : > { %5768 = vmatmul.mubr.bf16.gmra.mrb[12].mxu1 %v7751_v58  ;;  %5807 = vmatprep.subr.bf16.mxu1 %v6783_v8 }
  0xfc   : > { %5992 = vmatmul.mubr.bf16.gmra.mrb[12].mxu0 %v2617_v50  ;;  %5771 = vmatprep.mubr.bf16.mxu1 %v7755_v54  ;;  %v7769_v50 = vsel %vm853_vm0, %v871_v15, %v873_v7  ;;  %v877_v15 = vrot.slane %v7591_v41, 1 }
  0xfd   : > { %5995 = vmatprep.mubr.bf16.mxu0 %v2619_v10  ;;  %6032 = vmatpush3.bf16.msra.mxu0 %v6784_v33  ;;  %v7773_v10 = vsel %vm853_vm0, %v873_v7, %v875_v2  ;;  %v2623_v33 = vsel %vm1293_vm1, %v2620_v28, %v2622_v30  ;;  %v2625_v7 = vsel %vm1293_vm1, %v2622_v30, %v2624_v25 }
  0xfe   : > { %5808 = vmatpush3.bf16.msra.mxu1 %v6783_v8  ;;  %6033 = vmatprep.subr.bf16.mxu0 %v6786_v13  ;;  %v879_v8 = vrot.slane %v7633_v55, 1 }
  0xff   : > { %5809 = vmatprep.subr.bf16.mxu1 %v6785_v56 }
 0x100   : > { %v7789_v28 = vsel %vm853_vm0, %v877_v15, %v879_v8 }
 0x101   : > { %6034 = vmatpush3.bf16.msra.mxu0 %v6786_v13  ;;  %v2626_v13 = vrot.slane %v7562_v16, 2  ;;  %v2628_v16 = vrot.slane %v7599_v40, 2  ;;  %v2634_v40 = vrot.slane %v7645_v26, 2  ;;  %v2636_v26 = vrot.slane %v7676_v24, 2 }
 0x102   : > { %5810 = vmatpush3.bf16.msra.mxu1 %v6785_v56  ;;  %6075 = vmatprep.subr.bf16.mxu0 %v7764_v34  ;;  %v7785_v56 = vsel %vm853_vm0, %v875_v2, %v877_v15  ;;  %v883_v2 = vrot.slane %v7668_v59, 1 }
 0x103   : > { %5772 = vmatmul.mubr.bf16.gmra.mrb[16].mxu1 %v7769_v50  ;;  %5851 = vmatprep.subr.bf16.mxu1 %v7766_v9  ;;  %v2629_v15 = vsel %vm1293_vm1, %v2626_v13, %v2628_v16 }
 0x104   : > { %5996 = vmatmul.mubr.bf16.gmra.mrb[16].mxu0 %v2621_v36  ;;  %5775 = vmatprep.mubr.bf16.mxu1 %v7773_v10  ;;  %v2627_v36 = vsel %vm1293_vm1, %v2624_v25, %v2626_v13 }
 0x105   : > { %5999 = vmatprep.mubr.bf16.mxu0 %v2623_v33  ;;  %v881_v33 = vrot.slane %v7637_v0, 1 }
 0x107   : > { %v7799_v30 = vsel %vm853_vm0, %v879_v8, %v881_v33  ;;  %v7803_v25 = vsel %vm853_vm0, %v881_v33, %v883_v2  ;;  %v887_v8 = vrot.slane %v7693_v17, 1  ;;  %v2633_v33 = vsel %vm1293_vm1, %v2630_v60, %v2632_v42 }
 0x10b   : > { %5776 = vmatmul.mubr.bf16.gmra.mrb[20].mxu1 %v7785_v56 }
 0x10c   : > { %6000 = vmatmul.mubr.bf16.gmra.mrb[20].mxu0 %v2625_v7  ;;  %5779 = vmatprep.mubr.bf16.mxu1 %v7789_v28  ;;  %v2631_v7 = vsel %vm1293_vm1, %v2628_v16, %v2630_v60  ;;  %v2638_v60 = vrot.slane %v7681_v45, 2  ;;  %v2640_v45 = vrot.slane %v7701_v51, 2  ;;  %v1303_v51 = vrot.slane %v7447_v47, 2 }
 0x10d   : > { %6003 = vmatprep.mubr.bf16.mxu0 %v2627_v36  ;;  %v885_v36 = vrot.slane %v7671_v14, 1 }
 0x10f   : > { %v7813_v13 = vsel %vm853_vm0, %v883_v2, %v885_v36  ;;  %v7817_v16 = vsel %vm853_vm0, %v885_v36, %v887_v8  ;;  %v7825_v2 = vrot.slane %v7709_v4, 1 }
 0x113   : > { %5780 = vmatmul.mubr.bf16.gmra.mrb[24].mxu1 %v7799_v30 }
 0x114   : > { %6004 = vmatmul.mubr.bf16.gmra.mrb[24].mxu0 %v2629_v15  ;;  %5783 = vmatprep.mubr.bf16.mxu1 %v7803_v25  ;;  %v2635_v15 = vsel %vm1293_vm1, %v2632_v42, %v2634_v40  ;;  %v7833_v42 = vcombine.low %v7629_v12, %v7629_v12 }
 0x115   : > { %6007 = vmatprep.mubr.bf16.mxu0 %v2631_v7  ;;  %v889_v7 = vrot.slane %v7696_v38, 1 }
 0x117   : > { %v7829_v36 = vsel %vm853_vm0, %v887_v8, %v889_v7  ;;  %v7838_v43 = vsel %vm853_vm0, %v889_v7, %v7825_v2  ;;  %v893_v8 = vrot.slane %v7833_v42, 1  ;;  %v6789_v7 = vld [vmem:[#allocation6 + $0xc8] sm:$0xff]  }
 0x119   : > { %v894_v24 = vsel %vm853_vm0, %v7825_v2, %v893_v8 }
 0x11b   : > { %5784 = vmatmul.mubr.bf16.gmra.mrb[28].mxu1 %v7813_v13 }
 0x11c   : > { %6008 = vmatmul.mubr.bf16.gmra.mrb[28].mxu0 %v2633_v33  ;;  %5787 = vmatprep.mubr.bf16.mxu1 %v7817_v16  ;;  %v2637_v33 = vsel %vm1293_vm1, %v2634_v40, %v2636_v26  ;;  %v2641_v40 = vsel %vm1293_vm1, %v2638_v60, %v2640_v45  ;;  %v8536_v45 = vrot.slane %v7412_v20, 2  ;;  %v6796_v20 = vld [vmem:[#allocation6 + $0x1e0] sm:$0xff]  }
 0x11d   : > { %6011 = vmatprep.mubr.bf16.mxu0 %v2635_v15  ;;  %v2639_v15 = vsel %vm1293_vm1, %v2636_v26, %v2638_v60  ;;  %v6790_v26 = vld [vmem:[#allocation6 + $0x1c8] sm:$0xff]   ;;  %v8537_v60 = vld [vmem:[#allocation22_spill] sm:$0xff] }
 0x123   : > { %5788 = vmatmul.mubr.bf16.gmra.mrb[32].mxu1 %v7829_v36 }
 0x124   : > { %6012 = vmatmul.mubr.bf16.gmra.mrb[32].mxu0 %v2637_v33  ;;  %5791 = vmatprep.mubr.bf16.mxu1 %v7838_v43  ;;  %v6795_v33 = vld [vmem:[#allocation6 + $0xe0] sm:$0xff]  }
 0x125   : > { %6015 = vmatprep.mubr.bf16.mxu0 %v2639_v15 }
 0x12b   : > { %5792 = vmatmul.mubr.bf16.gmra.mrb[36].mxu1 %v894_v24  ;;  %v6791_v24 = vld [vmem:[#allocation6 + $0xd0] sm:$0xff]  }
 0x12c   : > { %6016 = vmatmul.mubr.bf16.gmra.mrb[36].mxu0 %v2641_v40  ;;  %5811 = vmatprep.mubr.bf16.mxu1 %v7608_v5  ;;  %v6792_v5 = vld [vmem:[#allocation6 + $0x1d0] sm:$0xff]   ;;  %v1309_v40 = vrot.slane %v7502_v27, 2 }
 0x12d   : > { %6035 = vmatprep.mubr.bf16.mxu0 %v7447_v47  ;;  %v6793_v47 = vld [vmem:[#allocation6 + $0xd8] sm:$0xff]  }
 0x133   : > { %5812 = vmatmul.mubr.bf16.vlgmr.msra.gmra.mrb[0].mxu1 %v7611_v63  ;;  %v1304_v63 = vsel %vm1293_vm1, %v8536_v45, %v1303_v51  ;;  %v1313_v45 = vrot.slane %v7548_v39, 2 }
 0x134   : > { %6036 = vmatmul.mubr.bf16.vlgmr.msra.gmra.mrb[0].mxu0 %v7451_v49  ;;  %5815 = vmatprep.mubr.bf16.mxu1 %v7614_v18  ;;  %v6794_v18 = vld [vmem:[#allocation6 + $0x1d8] sm:$0xff]  }
 0x135   : > { %6039 = vmatprep.mubr.bf16.mxu0 %v7495_v19  ;;  %6076 = vmatpush3.bf16.msra.mxu0 %v7764_v34  ;;  %v1305_v34 = vrot.slane %v7451_v49, 2  ;;  %v6798_v49 = vld [vmem:[#allocation6 + $0x1e8] sm:$0xff]  }
 0x136   : > { %5852 = vmatpush3.bf16.msra.mxu1 %v7766_v9  ;;  %6077 = vmatprep.subr.bf16.mxu0 %v6790_v26  ;;  %v1307_v9 = vrot.slane %v7495_v19, 2  ;;  %v6797_v19 = vld [vmem:[#allocation6 + $0xe8] sm:$0xff]  }
 0x137   : > { %5853 = vmatprep.subr.bf16.mxu1 %v6789_v7  ;;  %v7866_v15 = vsel %vm1293_vm1, %v1303_v51, %v1305_v34  ;;  %v6799_v51 = vld [vmem:[#allocation6 + $0xf0] sm:$0xff]  }
 0x138   : > { %v7869_v8 = vsel %vm1293_vm1, %v1305_v34, %v1307_v9 }
 0x139   : > { %6078 = vmatpush3.bf16.msra.mxu0 %v6790_v26  ;;  %v1311_v26 = vrot.slane %v7541_v57, 2 }
 0x13a   : > { %5854 = vmatpush3.bf16.msra.mxu1 %v6789_v7  ;;  %6079 = vmatprep.subr.bf16.mxu0 %v6792_v5  ;;  %v6800_v7 = vld [vmem:[#allocation6 + $0x1f0] sm:$0xff]  }
 0x13b   : > { %5816 = vmatmul.mubr.bf16.gmra.mrb[4].mxu1 %v8537_v60  ;;  %5855 = vmatprep.subr.bf16.mxu1 %v6791_v24  ;;  %v7892_v60 = vsel %vm1293_vm1, %v1311_v26, %v1313_v45 }
 0x13c   : > { %6040 = vmatmul.mubr.bf16.gmra.mrb[4].mxu0 %v7502_v27  ;;  %5819 = vmatprep.mubr.bf16.mxu1 %v1304_v63  ;;  %v6802_v27 = vld [vmem:[#allocation6 + $0x1f8] sm:$0xff]   ;;  %v1315_v63 = vrot.slane %v7584_v23, 2 }
 0x13d   : > { %6043 = vmatprep.mubr.bf16.mxu0 %v7541_v57  ;;  %6080 = vmatpush3.bf16.msra.mxu0 %v6792_v5  ;;  %v7878_v5 = vsel %vm1293_vm1, %v1307_v9, %v1309_v40  ;;  %v6801_v57 = vld [vmem:[#allocation6 + $0xf8] sm:$0xff]  }
 0x13e   : > { %5856 = vmatpush3.bf16.msra.mxu1 %v6791_v24  ;;  %6081 = vmatprep.subr.bf16.mxu0 %v6794_v18  ;;  %v7881_v24 = vsel %vm1293_vm1, %v1309_v40, %v1311_v26  ;;  %v7940_v26 = vcombine.low %v7658_v48, %v7661_v22 }
 0x13f   : > { %5857 = vmatprep.subr.bf16.mxu1 %v6793_v47 }
 0x141   : > { %6082 = vmatpush3.bf16.msra.mxu0 %v6794_v18  ;;  %v7889_v18 = vld [vmem:[#allocation6 + $0x200] sm:$0xff]  }
 0x142   : > { %5858 = vmatpush3.bf16.msra.mxu1 %v6793_v47  ;;  %6083 = vmatprep.subr.bf16.mxu0 %v6796_v20  ;;  %v7895_v47 = vsel %vm1293_vm1, %v1313_v45, %v1315_v63  ;;  %v362_v45 = vld [vmem:[%s7283_s9 + $0xc0] sm:$0xf] }
 0x143   : > { %5820 = vmatmul.mubr.bf16.gmra.mrb[8].mxu1 %v7866_v15  ;;  %5859 = vmatprep.subr.bf16.mxu1 %v6795_v33 }
 0x144   : > { %6044 = vmatmul.mubr.bf16.gmra.mrb[8].mxu0 %v7548_v39  ;;  %5823 = vmatprep.mubr.bf16.mxu1 %v7869_v8  ;;  %v1317_v39 = vrot.slane %v7591_v41, 2 }
 0x145   : > { %6047 = vmatprep.mubr.bf16.mxu0 %v7584_v23  ;;  %6084 = vmatpush3.bf16.msra.mxu0 %v6796_v20  ;;  %v1319_v23 = vrot.slane %v7633_v55, 2  ;;  %v1321_v20 = vrot.slane %v7637_v0, 2 }
 0x146   : > { %5860 = vmatpush3.bf16.msra.mxu1 %v6795_v33  ;;  %6085 = vmatprep.subr.bf16.mxu0 %v6798_v49  ;;  %v7905_v34 = vsel %vm1293_vm1, %v1315_v63, %v1317_v39  ;;  %v1333_v63 = vrot.slane %v7833_v42, 2  ;;  %v6805_v42 = vld [vmem:[#allocation6 + $0x210] sm:$0xff]  }
 0x147   : > { %5861 = vmatprep.subr.bf16.mxu1 %v6797_v19  ;;  %v7908_v9 = vsel %vm1293_vm1, %v1317_v39, %v1319_v23 }
 0x149   : > { %6086 = vmatpush3.bf16.msra.mxu0 %v6798_v49  ;;  %v1325_v49 = vrot.slane %v7671_v14, 2 }
 0x14a   : > { %5862 = vmatpush3.bf16.msra.mxu1 %v6797_v19  ;;  %6087 = vmatprep.subr.bf16.mxu0 %v6800_v7  ;;  %v7933_v19 = vcombine.low %v7629_v12, %v7655_v11  ;;  %v1329_v12 = vrot.slane %v7696_v38, 2  ;;  %v7950_v11 = vrot.slane %v7709_v4, 2 }
 0x14b   : > { %5824 = vmatmul.mubr.bf16.gmra.mrb[12].mxu1 %v7878_v5  ;;  %5863 = vmatprep.subr.bf16.mxu1 %v6799_v51 }
 0x14c   : > { %6048 = vmatmul.mubr.bf16.gmra.mrb[12].mxu0 %v7591_v41  ;;  %5827 = vmatprep.mubr.bf16.mxu1 %v7881_v24  ;;  %v1323_v41 = vrot.slane %v7668_v59, 2 }
 0x14d   : > { %6051 = vmatprep.mubr.bf16.mxu0 %v7633_v55  ;;  %6088 = vmatpush3.bf16.msra.mxu0 %v6800_v7  ;;  %v7917_v55 = vsel %vm1293_vm1, %v1319_v23, %v1321_v20  ;;  %v361_v7 = vld [vmem:[%s7283_s9 + $0xbc] sm:$0xf] }
 0x14e   : > { %5864 = vmatpush3.bf16.msra.mxu1 %v6799_v51  ;;  %6089 = vmatprep.subr.bf16.mxu0 %v6802_v27  ;;  %v7920_v33 = vsel %vm1293_vm1, %v1321_v20, %v1323_v41  ;;  %v6804_v20 = vld [vmem:[#allocation6 + $0x208] sm:$0xff]  }
 0x14f   : > { %5865 = vmatprep.subr.bf16.mxu1 %v6801_v57 }
 0x151   : > { %6090 = vmatpush3.bf16.msra.mxu0 %v6802_v27  ;;  %v7959_v27 = vcombine.low %v7664_v21, %v7688_v52  ;;  %v1334_v52 = vsel %vm1293_vm1, %v7950_v11, %v1333_v63 }
 0x152   : > { %5866 = vmatpush3.bf16.msra.mxu1 %v6801_v57  ;;  %6131 = vmatprep.subr.bf16.mxu0 %v7889_v18  ;;  %v7963_v57 = vsel %vm1293_vm1, %v1329_v12, %v7950_v11 }
 0x153   : > { %5828 = vmatmul.mubr.bf16.gmra.mrb[16].mxu1 %v7892_v60 }
 0x154   : > { %6052 = vmatmul.mubr.bf16.gmra.mrb[16].mxu0 %v7637_v0  ;;  %5831 = vmatprep.mubr.bf16.mxu1 %v7895_v47  ;;  %v1327_v0 = vrot.slane %v7693_v17, 2 }
 0x155   : > { %6055 = vmatprep.mubr.bf16.mxu0 %v7668_v59  ;;  %v7929_v59 = vsel %vm1293_vm1, %v1323_v41, %v1325_v49  ;;  %v6806_v41 = vld [vmem:[#allocation6 + $0x218] sm:$0xff]  }
 0x156   : > { %v7936_v40 = vsel %vm1293_vm1, %v1325_v49, %v1327_v0  ;;  %v7955_v22 = vsel %vm1293_vm1, %v1327_v0, %v1329_v12  ;;  %v8547_v49 = vld [vmem:[#allocation26_spill] sm:$0xff] }
 0x15b   : > { %5832 = vmatmul.mubr.bf16.gmra.mrb[20].mxu1 %v7905_v34 }
 0x15c   : > { %6056 = vmatmul.mubr.bf16.gmra.mrb[20].mxu0 %v7671_v14  ;;  %5835 = vmatprep.mubr.bf16.mxu1 %v7908_v9  ;;  %v360_v14 = vld [vmem:[%s7283_s9 + $0xb8] sm:$0xf] }
 0x15d   : > { %6059 = vmatprep.mubr.bf16.mxu0 %v7693_v17  ;;  %v8538_v17 = vmov 0  }
 0x15e   : > { %v411_v51 = vmax.bf16 %v8538_v17, %v360_v14  ;;  %v412_v48 = vmax.bf16 %v8538_v17, %v361_v7  ;;  %v413_v39 = vmax.bf16 %v8538_v17, %v362_v45 }
 0x163   : > { %5836 = vmatmul.mubr.bf16.gmra.mrb[24].mxu1 %v7917_v55 }
 0x164   : > { %6060 = vmatmul.mubr.bf16.gmra.mrb[24].mxu0 %v7696_v38  ;;  %5839 = vmatprep.mubr.bf16.mxu1 %v7920_v33  ;;  %v7965_v38 = vcombine.low %v411_v51, %v412_v48 }
 0x165   : > { %6063 = vmatprep.mubr.bf16.mxu0 %v7709_v4  ;;  %v363_v4 = vld [vmem:[%s7283_s9 + $0xc4] sm:$0xf] }
 0x166   : > { %v414_v21 = vmax.bf16 %v8538_v17, %v363_v4 }
 0x168   : > { %v7978_v23 = vcombine.low %v413_v39, %v414_v21 }
 0x16b   : > { %5840 = vmatmul.mubr.bf16.gmra.mrb[28].mxu1 %v7929_v59 }
 0x16c   : > { %6064 = vmatmul.mubr.bf16.gmra.mrb[28].mxu0 %v7933_v19  ;;  %5843 = vmatprep.mubr.bf16.mxu1 %v7936_v40 }
 0x16d   : > { %6067 = vmatprep.mubr.bf16.mxu0 %v7940_v26 }
 0x173   : > { %5844 = vmatmul.mubr.bf16.gmra.mrb[32].mxu1 %v7955_v22 }
 0x174   : > { %6068 = vmatmul.mubr.bf16.gmra.mrb[32].mxu0 %v7959_v27  ;;  %5847 = vmatprep.mubr.bf16.mxu1 %v7963_v57 }
 0x175   : > { %6071 = vmatprep.mubr.bf16.mxu0 %v7965_v38 }
 0x17b   : > { %5848 = vmatmul.mubr.bf16.gmra.mrb[36].mxu1 %v1334_v52 }
 0x17c   : > { %6072 = vmatmul.mubr.bf16.gmra.mrb[36].mxu0 %v7978_v23  ;;  %5867 = vmatprep.mubr.bf16.mxu1 %v7320_v31  ;;  %v6807_v31 = vld [vmem:[#allocation6 + $0x220] sm:$0xff]  }
 0x17d   : > { %6091 = vmatprep.mubr.bf16.mxu0 %v7737_v35  ;;  %v3443_v35 = vrot.slane %v7959_v27, 1 }
 0x183   : > { %5868 = vmatmul.mubr.bf16.vlgmr.msra.gmra.mrb[0].mxu1 %v7324_v32  ;;  %v6808_v32 = vld [vmem:[#allocation6 + $0x228] sm:$0xff]  }
 0x184   : > { %6092 = vmatmul.mubr.bf16.vlgmr.msra.gmra.mrb[0].mxu0 %v7741_v3  ;;  %5871 = vmatprep.mubr.bf16.mxu1 %v7344_v44  ;;  %v6809_v44 = vld [vmem:[#allocation6 + $0x230] sm:$0xff]  }
 0x185   : > { %6095 = vmatprep.mubr.bf16.mxu0 %v7751_v58  ;;  %6132 = vmatpush3.bf16.msra.mxu0 %v7889_v18 }
 0x186   : > { %6133 = vmatprep.subr.bf16.mxu0 %v6804_v20 }
 0x189   : > { %6134 = vmatpush3.bf16.msra.mxu0 %v6804_v20 }
 0x18a   : > { %6135 = vmatprep.subr.bf16.mxu0 %v6805_v42 }
 0x18b   : > { %5872 = vmatmul.mubr.bf16.gmra.mrb[4].mxu1 %v7349_v46  ;;  %v6810_v46 = vld [vmem:[#allocation6 + $0x238] sm:$0xff]  }
 0x18c   : > { %6096 = vmatmul.mubr.bf16.gmra.mrb[4].mxu0 %v7755_v54  ;;  %5875 = vmatprep.mubr.bf16.mxu1 %v7378_v1  ;;  %v8539_v1 = vld [vmem:[#allocation17_spill] sm:$0xff] }
 0x18d   : > { %6099 = vmatprep.mubr.bf16.mxu0 %v7769_v50  ;;  %6136 = vmatpush3.bf16.msra.mxu0 %v6805_v42  ;;  %v364_v54 = vld [vmem:[%s7283_s9 + $0xc8] sm:$0xf] }
 0x18e   : > { %6137 = vmatprep.subr.bf16.mxu0 %v6806_v41  ;;  %v8543_v50 = vld [vmem:[#allocation21_spill] sm:$0xff] }
 0x191   : > { %6138 = vmatpush3.bf16.msra.mxu0 %v6806_v41 }
 0x192   : > { %6139 = vmatprep.subr.bf16.mxu0 %v6807_v31 }
 0x193   : > { %5876 = vmatmul.mubr.bf16.gmra.mrb[8].mxu1 %v7386_v6  ;;  %v8540_v6 = vld [vmem:[#allocation18_spill] sm:$0xff] }
 0x194   : > { %6100 = vmatmul.mubr.bf16.gmra.mrb[8].mxu0 %v7773_v10  ;;  %5879 = vmatprep.mubr.bf16.mxu1 %v7419_v29  ;;  %v3439_v29 = vrot.slane %v7933_v19, 1  ;;  %v8544_v10 = vld [vmem:[#allocation23_spill] sm:$0xff] }
 0x195   : > { %6103 = vmatprep.mubr.bf16.mxu0 %v7785_v56  ;;  %6140 = vmatpush3.bf16.msra.mxu0 %v6807_v31  ;;  %v415_v56 = vmax.bf16 %v8538_v17, %v364_v54 }
 0x196   : > { %6141 = vmatprep.subr.bf16.mxu0 %v6808_v32 }
 0x199   : > { %6142 = vmatpush3.bf16.msra.mxu0 %v6808_v32 }
 0x19a   : > { %6143 = vmatprep.subr.bf16.mxu0 %v6809_v44 }
 0x19b   : > { %5880 = vmatmul.mubr.bf16.gmra.mrb[12].mxu1 %v7426_v37  ;;  %v3440_v37 = vsel %vm853_vm0, %v7825_v2, %v3439_v29  ;;  %v8546_v2 = vld [vmem:[#allocation25_spill] sm:$0xff] }
 0x19c   : > { %6104 = vmatmul.mubr.bf16.gmra.mrb[12].mxu0 %v7789_v28  ;;  %5883 = vmatprep.mubr.bf16.mxu1 %v7458_v53  ;;  %v8541_v53 = vld [vmem:[#allocation19_spill] sm:$0xff]  ;;  %v3447_v28 = vrot.slane %v7978_v23, 1 }
 0x19d   : > { %6107 = vmatprep.mubr.bf16.mxu0 %v7799_v30  ;;  %6144 = vmatpush3.bf16.msra.mxu0 %v6809_v44 }
 0x19e   : > { %6145 = vmatprep.subr.bf16.mxu0 %v6810_v46 }
 0x1a1   : > { %6146 = vmatpush3.bf16.msra.mxu0 %v6810_v46 }
 0x1a3   : > { %5884 = vmatmul.mubr.bf16.gmra.mrb[16].mxu1 %v8539_v1 }
 0x1a4   : > { %6108 = vmatmul.mubr.bf16.gmra.mrb[16].mxu0 %v7803_v25  ;;  %5887 = vmatprep.mubr.bf16.mxu1 %v7514_v61  ;;  %v8542_v61 = vld [vmem:[#allocation20_spill] sm:$0xff]  ;;  %v5118_v25 = vcombine.low %v415_v56, %v415_v56 }
 0x1a5   : > { %6111 = vmatprep.mubr.bf16.mxu0 %v7813_v13 }
 0x1a6   : > { %v3845_v0 = vrot.slane %v5118_v25, 2 }
 0x1ab   : > { %5888 = vmatmul.mubr.bf16.gmra.mrb[20].mxu1 %v7521_v62  ;;  %v3441_v62 = vrot.slane %v7940_v26, 1 }
 0x1ac   : > { %6112 = vmatmul.mubr.bf16.gmra.mrb[20].mxu0 %v7817_v16  ;;  %5891 = vmatprep.mubr.bf16.mxu1 %v8540_v6  ;;  %v8545_v16 = vld [vmem:[#allocation24_spill] sm:$0xff] }
 0x1ad   : > { %6115 = vmatprep.mubr.bf16.mxu0 %v7829_v36  ;;  %v3442_v3 = vsel %vm853_vm0, %v3439_v29, %v3441_v62  ;;  %v3444_v58 = vsel %vm853_vm0, %v3441_v62, %v3443_v35  ;;  %v3449_v36 = vrot.slane %v5118_v25, 1 }
 0x1af   : > { %v3450_v18 = vsel %vm853_vm0, %v3447_v28, %v3449_v36 }
 0x1b3   : > { %5892 = vmatmul.mubr.bf16.gmra.mrb[24].mxu1 %v8541_v53 }
 0x1b4   : > { %6116 = vmatmul.mubr.bf16.gmra.mrb[24].mxu0 %v7838_v43  ;;  %5895 = vmatprep.mubr.bf16.mxu1 %v8542_v61  ;;  %v3445_v43 = vrot.slane %v7965_v38, 1 }
 0x1b5   : > { %6119 = vmatprep.mubr.bf16.mxu0 %v3440_v37 }
 0x1b6   : > { %v3446_v30 = vsel %vm853_vm0, %v3443_v35, %v3445_v43  ;;  %v3448_v13 = vsel %vm853_vm0, %v3445_v43, %v3447_v28 }
 0x1bb   : > { %5896 = vmatmul.mubr.bf16.gmra.mrb[28].mxu1 %v8543_v50 }
 0x1bc   : > { %6120 = vmatmul.mubr.bf16.gmra.mrb[28].mxu0 %v3442_v3  ;;  %5899 = vmatprep.mubr.bf16.mxu1 %v8544_v10 }
 0x1bd   : > { %6123 = vmatprep.mubr.bf16.mxu0 %v3444_v58 }
 0x1c3   : > { %5900 = vmatmul.mubr.bf16.gmra.mrb[32].mxu1 %v8545_v16 }
 0x1c4   : > { %6124 = vmatmul.mubr.bf16.gmra.mrb[32].mxu0 %v3446_v30  ;;  %5903 = vmatprep.mubr.bf16.mxu1 %v8546_v2 }
 0x1c5   : > { %6127 = vmatprep.mubr.bf16.mxu0 %v3448_v13 }
 0x1cb   : > { %5904 = vmatmul.mubr.bf16.gmra.mrb[36].mxu1 %v8547_v49 }
 0x1cc   : > { %6128 = vmatmul.mubr.bf16.gmra.mrb[36].mxu0 %v3450_v18 }
 0x1cd   : > { %6147 = vmatprep.mubr.bf16.mxu0 %v7866_v15  ;;  %v3835_v15 = vrot.slane %v7933_v19, 2 }
 0x1d4   : > { %6148 = vmatmul.mubr.bf16.vlgmr.msra.gmra.mrb[0].mxu0 %v7869_v8  ;;  %v3836_v8 = vsel %vm1293_vm1, %v7950_v11, %v3835_v15 }
 0x1d5   : > { %6151 = vmatprep.mubr.bf16.mxu0 %v7878_v5  ;;  %v3837_v5 = vrot.slane %v7940_v26, 2 }
 0x1dc   : > { %6152 = vmatmul.mubr.bf16.gmra.mrb[4].mxu0 %v7881_v24  ;;  %v3839_v24 = vrot.slane %v7959_v27, 2 }
 0x1dd   : > { %6155 = vmatprep.mubr.bf16.mxu0 %v7892_v60  ;;  %v3838_v60 = vsel %vm1293_vm1, %v3835_v15, %v3837_v5 }
 0x1e4   : > { %6156 = vmatmul.mubr.bf16.gmra.mrb[8].mxu0 %v7895_v47  ;;  %v3840_v47 = vsel %vm1293_vm1, %v3837_v5, %v3839_v24 }
 0x1e5   : > { %6159 = vmatprep.mubr.bf16.mxu0 %v7905_v34  ;;  %v3841_v34 = vrot.slane %v7965_v38, 2 }
 0x1ec   : > { %6160 = vmatmul.mubr.bf16.gmra.mrb[12].mxu0 %v7908_v9  ;;  %v3843_v9 = vrot.slane %v7978_v23, 2 }
 0x1ed   : > { %6163 = vmatprep.mubr.bf16.mxu0 %v7917_v55  ;;  %v3842_v55 = vsel %vm1293_vm1, %v3839_v24, %v3841_v34 }
 0x1f4   : > { %6164 = vmatmul.mubr.bf16.gmra.mrb[16].mxu0 %v7920_v33  ;;  %v3844_v33 = vsel %vm1293_vm1, %v3841_v34, %v3843_v9 }
 0x1f5   : > { %6167 = vmatprep.mubr.bf16.mxu0 %v7929_v59  ;;  %v3846_v59 = vsel %vm1293_vm1, %v3843_v9, %v3845_v0 }
 0x1fc   : > { %6168 = vmatmul.mubr.bf16.gmra.mrb[20].mxu0 %v7936_v40 }
 0x1fd   : > { %6171 = vmatprep.mubr.bf16.mxu0 %v7955_v22 }
 0x204   : > { %6172 = vmatmul.mubr.bf16.gmra.mrb[24].mxu0 %v7963_v57  ;;  %v8064_v57 = vld [vmem:[#allocation8 + $0x8] sm:$0xff] }
 0x205   : > { %6175 = vmatprep.mubr.bf16.mxu0 %v3836_v8  ;;  %4525 = vmatprep.mubr.f32.mxu1 %v8064_v57 }
 0x20c   : > { %6176 = vmatmul.mubr.bf16.gmra.mrb[28].mxu0 %v3838_v60 }
 0x20d   : > { %6179 = vmatprep.mubr.bf16.mxu0 %v3840_v47 }
 0x214   : > { %6180 = vmatmul.mubr.bf16.gmra.mrb[32].mxu0 %v3842_v55 }
 0x215   : > { %6183 = vmatprep.mubr.bf16.mxu0 %v3844_v33 }
 0x21c   : > { %6184 = vmatmul.mubr.bf16.gmra.mrb[36].mxu0 %v3846_v59 }
 0x256   : > { %v5869_v19 = vpop.f32.mrb[0].mxu1 }
 0x257   : > { %v1863_v40 = vpop.f32.mrb[1].mxu1 }
 0x258   : > { %v5870_v26 = vpop.f32.mrb[2].mxu1 }
 0x259   : > { %v1866_v14 = vpop.f32.mrb[3].mxu1 }
 0x25e   : > { %v5873_v7 = vpop.f32.mrb[4].mxu1 }
 0x25f   : > { %v1879_v12 = vpop.f32.mrb[5].mxu1 }
 0x260   : > { %v5874_v11 = vpop.f32.mrb[6].mxu1 }
 0x261   : > { %v1882_v17 = vpop.f32.mrb[7].mxu1 }
 0x266   : > { %v8056_v51 = vpop.f32.mrb[8].mxu1 }
 0x267   : > { %v8058_v48 = vpop.f32.mrb[9].mxu1 }
 0x268   : > { %v8060_v22 = vpop.f32.mrb[10].mxu1 }
 0x269   : > { %v8062_v27 = vpop.f32.mrb[11].mxu1 }
 0x26e   : > { %v8066_v38 = vpop.f32.mrb[12].mxu1 }
 0x26f   : > { %v8069_v45 = vpop.f32.mrb[13].mxu1 }
 0x270   : > { %v8071_v4 = vpop.f32.mrb[14].mxu1 }
 0x271   : > { %v8073_v63 = vpop.f32.mrb[15].mxu1 }
 0x276   : > { %v8075_v39 = vpop.f32.mrb[16].mxu1 }
 0x277   : > { %v8077_v21 = vpop.f32.mrb[17].mxu1 }
 0x278   : > { %v8079_v52 = vpop.f32.mrb[18].mxu1 }
 0x279   : > { %v8081_v23 = vpop.f32.mrb[19].mxu1 }
 0x27e   : > { %v8083_v20 = vpop.f32.mrb[20].mxu1 }
 0x27f   : > { %v8085_v42 = vpop.f32.mrb[21].mxu1 }
 0x280   : > { %v8087_v41 = vpop.f32.mrb[22].mxu1 }
 0x281   : > { %v8089_v31 = vpop.f32.mrb[23].mxu1 }
 0x286   : > { %v8091_v32 = vpop.f32.mrb[24].mxu1 }
 0x287   : > { %v8093_v44 = vpop.f32.mrb[25].mxu1 }
 0x288   : > { %v8095_v46 = vpop.f32.mrb[26].mxu1 }
 0x289   : > { %v8097_v1 = vpop.f32.mrb[27].mxu1 }
 0x28e   : > { %v8099_v6 = vpop.f32.mrb[28].mxu1 }
 0x28f   : > { %v8101_v29 = vpop.f32.mrb[29].mxu1 }
 0x290   : > { %v8103_v37 = vpop.f32.mrb[30].mxu1 }
 0x291   : > { %v8105_v53 = vpop.f32.mrb[31].mxu1 }
 0x296   : > { %v8107_v61 = vpop.f32.mrb[32].mxu1 }
 0x297   : > { %v8109_v62 = vpop.f32.mrb[33].mxu1 }
 0x298   : > { %v8111_v35 = vpop.f32.mrb[34].mxu1 }
 0x299   : > { %v8113_v3 = vpop.f32.mrb[35].mxu1 }
 0x29e   : > { %v8115_v58 = vpop.f32.mrb[36].mxu1 }
 0x29f   : > { %v8117_v54 = vpop.f32.mrb[37].mxu1 }
 0x2a0   : > { %v8119_v50 = vpop.f32.mrb[38].mxu1 }
 0x2a1   : > { %v8121_v10 = vpop.f32.mrb[39].mxu1 }
 0x2a7   : > { %v6149_v43 = vpop.f32.mrb[0].mxu0 }
 0x2a8   : > { %v6313_v56 = vadd.f32 %v6149_v43, %v5869_v19  ;;  %v3935_v28 = vpop.f32.mrb[1].mxu0 }
 0x2a9   : > { %v6314_v30 = vadd.f32 %v3935_v28, %v1863_v40  ;;  %v6150_v25 = vpop.f32.mrb[2].mxu0 }
 0x2aa   : > { %v6315_v13 = vadd.f32 %v6150_v25, %v5870_v26  ;;  %v3938_v16 = vpop.f32.mrb[3].mxu0  ;;  %v8124_v36 = vmul.f32 %v6313_v56, %v6313_v56 }
 0x2ab   : > { %v6316_v2 = vadd.f32 %v3938_v16, %v1866_v14  ;;  %v8130_v15 = vmul.f32 %v6314_v30, %v6314_v30 }
 0x2ac   : > { %v8126_v18 = vpack.c.bf16 %v6315_v13, %v6313_v56  ;;  %v8128_v49 = vmul.f32 %v6315_v13, %v6315_v13 }
 0x2ad   : > { %v8132_v8 = vpack.c.bf16 %v6316_v2, %v6314_v30  ;;  %v8134_v5 = vmul.f32 %v6316_v2, %v6316_v2 }
 0x2ae   : > { %5324 = vst [vmem:[%s8136_s28 + $0x8] sm:$0xff] %v8126_v18  }
 0x2af   : > { %5228 = vst [vmem:[%s8136_s28] sm:$0xff] %v8132_v8   ;;  %v6271_v60 = vpack.c.bf16 %v8134_v5, %v8130_v15  ;;  %v6153_v47 = vpop.f32.mrb[4].mxu0 }
 0x2b0   : > { %v6317_v34 = vadd.f32 %v6153_v47, %v5873_v7  ;;  %v3951_v9 = vpop.f32.mrb[5].mxu0 }
 0x2b1   : > { %v6318_v55 = vadd.f32 %v3951_v9, %v1879_v12  ;;  %v6154_v33 = vpop.f32.mrb[6].mxu0 }
 0x2b2   : > { %v6319_v0 = vadd.f32 %v6154_v33, %v5874_v11  ;;  %v3954_v59 = vpop.f32.mrb[7].mxu0  ;;  %v8146_v40 = vmul.f32 %v6317_v34, %v6317_v34 }
 0x2b3   : > { %v6320_v19 = vadd.f32 %v3954_v59, %v1882_v17  ;;  %v8152_v43 = vmul.f32 %v6318_v55, %v6318_v55 }
 0x2b4   : > { %v8148_v26 = vpack.c.bf16 %v6319_v0, %v6317_v34  ;;  %v8150_v14 = vmul.f32 %v6319_v0, %v6319_v0 }
 0x2b5   : > { %v8154_v56 = vpack.c.bf16 %v6320_v19, %v6318_v55  ;;  %v8156_v28 = vmul.f32 %v6320_v19, %v6320_v19 }
 0x2b6   : > { %5326 = vst [vmem:[%s8136_s28 + $0x18] sm:$0xff] %v8148_v26  }
 0x2b7   : > { %5325 = vst [vmem:[%s8136_s28 + $0x10] sm:$0xff] %v8154_v56   ;;  %v6157_v11 = vpop.f32.mrb[8].mxu0 }
 0x2b8   : > { %v6321_v17 = vadd.f32 %v6157_v11, %v8056_v51  ;;  %v3967_v30 = vpop.f32.mrb[9].mxu0 }
 0x2b9   : > { %v6322_v25 = vadd.f32 %v3967_v30, %v8058_v48  ;;  %v6158_v13 = vpop.f32.mrb[10].mxu0 }
 0x2ba   : > { %v6323_v16 = vadd.f32 %v6158_v13, %v8060_v22  ;;  %v3970_v2 = vpop.f32.mrb[11].mxu0  ;;  %v8170_v34 = vmul.f32 %v6321_v17, %v6321_v17 }
 0x2bb   : > { %v6324_v47 = vadd.f32 %v3970_v2, %v8062_v27  ;;  %v8176_v33 = vmul.f32 %v6322_v25, %v6322_v25 }
 0x2bc   : > { %v8172_v9 = vpack.c.bf16 %v6323_v16, %v6321_v17  ;;  %v8174_v55 = vmul.f32 %v6323_v16, %v6323_v16 }
 0x2bd   : > { %v8178_v0 = vpack.c.bf16 %v6324_v47, %v6322_v25  ;;  %v8180_v51 = vmul.f32 %v6324_v47, %v6324_v47 }
 0x2be   : > { %5328 = vst [vmem:[%s8136_s28 + $0x28] sm:$0xff] %v8172_v9  }
 0x2bf   : > { %5327 = vst [vmem:[%s8136_s28 + $0x20] sm:$0xff] %v8178_v0   ;;  %v6161_v27 = vpop.f32.mrb[12].mxu0 }
 0x2c0   : > { %v6325_v59 = vadd.f32 %v6161_v27, %v8066_v38  ;;  %v3983_v19 = vpop.f32.mrb[13].mxu0 }
 0x2c1   : > { %v6326_v11 = vadd.f32 %v3983_v19, %v8069_v45  ;;  %v6162_v17 = vpop.f32.mrb[14].mxu0 }
 0x2c2   : > { %v6327_v30 = vadd.f32 %v6162_v17, %v8071_v4  ;;  %v3986_v25 = vpop.f32.mrb[15].mxu0  ;;  %v8194_v16 = vmul.f32 %v6325_v59, %v6325_v59 }
 0x2c3   : > { %v6328_v13 = vadd.f32 %v3986_v25, %v8073_v63  ;;  %v8200_v48 = vmul.f32 %v6326_v11, %v6326_v11 }
 0x2c4   : > { %v8196_v2 = vpack.c.bf16 %v6327_v30, %v6325_v59  ;;  %v8198_v47 = vmul.f32 %v6327_v30, %v6327_v30 }
 0x2c5   : > { %v8202_v22 = vpack.c.bf16 %v6328_v13, %v6326_v11  ;;  %v8204_v38 = vmul.f32 %v6328_v13, %v6328_v13 }
 0x2c6   : > { %5330 = vst [vmem:[%s8136_s28 + $0x38] sm:$0xff] %v8196_v2  }
 0x2c7   : > { %5329 = vst [vmem:[%s8136_s28 + $0x30] sm:$0xff] %v8202_v22   ;;  %v6165_v63 = vpop.f32.mrb[16].mxu0  ;;  %v8553_v15 = vpack.c.bf16 %v8204_v38, %v8200_v48 }
 0x2c8   : > { %v6329_v27 = vadd.f32 %v6165_v63, %v8075_v39  ;;  %v3999_v59 = vpop.f32.mrb[17].mxu0 }
 0x2c9   : > { %v6330_v19 = vadd.f32 %v3999_v59, %v8077_v21  ;;  %v6166_v11 = vpop.f32.mrb[18].mxu0 }
 0x2ca   : > { %v6331_v17 = vadd.f32 %v6166_v11, %v8079_v52  ;;  %v4002_v30 = vpop.f32.mrb[19].mxu0  ;;  %v8218_v13 = vmul.f32 %v6329_v27, %v6329_v27 }
 0x2cb   : > { %v6332_v25 = vadd.f32 %v4002_v30, %v8081_v23  ;;  %v8222_v12 = vmul.f32 %v6330_v19, %v6330_v19 }
 0x2cc   : > { %v5272_v45 = vpack.c.bf16 %v6331_v17, %v6329_v27  ;;  %v8220_v7 = vmul.f32 %v6331_v17, %v6331_v17 }
 0x2cd   : > { %v5267_v4 = vpack.c.bf16 %v6332_v25, %v6330_v19  ;;  %v8224_v24 = vmul.f32 %v6332_v25, %v6332_v25 }
 0x2ce   : > { %5332 = vst [vmem:[%s8136_s28 + $0x48] sm:$0xff] %v5272_v45   ;;  %v6273_v39 = vpack.c.bf16 %v8220_v7, %v8218_v13 }
 0x2cf   : > { %5331 = vst [vmem:[%s8136_s28 + $0x40] sm:$0xff] %v5267_v4   ;;  %v6169_v21 = vpop.f32.mrb[20].mxu0  ;;  %6226 = vmatprep.subr.bf16.mxu1 %v5267_v4  ;;  %v6269_v52 = vpack.c.bf16 %v8224_v24, %v8222_v12  ;;  %v8555_v24 = vpack.c.bf16 %v8198_v47, %v8194_v16 }
 0x2d0   : > { %v6333_v23 = vadd.f32 %v6169_v21, %v8083_v20  ;;  %v4015_v63 = vpop.f32.mrb[21].mxu0  ;;  %6228 = vmatpush3.bf16.msra.mxu1 %v8132_v8 }
 0x2d1   : > { %v6334_v27 = vadd.f32 %v4015_v63, %v8085_v42  ;;  %v6170_v59 = vpop.f32.mrb[22].mxu0  ;;  %6230 = vmatprep.subr.bf16.mxu1 %v5272_v45 }
 0x2d2   : > { %v6335_v19 = vadd.f32 %v6170_v59, %v8087_v41  ;;  %v4018_v11 = vpop.f32.mrb[23].mxu0  ;;  %v8237_v4 = vmul.f32 %v6333_v23, %v6333_v23 }
 0x2d3   : > { %v6336_v17 = vadd.f32 %v4018_v11, %v8089_v31  ;;  %v8242_v20 = vmul.f32 %v6334_v27, %v6334_v27 }
 0x2d4   : > { %v5282_v30 = vpack.c.bf16 %v6335_v19, %v6333_v23  ;;  %v8239_v25 = vmul.f32 %v6335_v19, %v6335_v19  ;;  %6232 = vmatpush3.bf16.msra.mxu1 %v8126_v18 }
 0x2d5   : > { %v5277_v8 = vpack.c.bf16 %v6336_v17, %v6334_v27  ;;  %v8244_v21 = vmul.f32 %v6336_v17, %v6336_v17 }
 0x2d6   : > { %5334 = vst [vmem:[%s8136_s28 + $0x58] sm:$0xff] %v5282_v30   ;;  %v6281_v42 = vpack.c.bf16 %v8239_v25, %v8237_v4 }
 0x2d7   : > { %5333 = vst [vmem:[%s8136_s28 + $0x50] sm:$0xff] %v5277_v8   ;;  %v6173_v41 = vpop.f32.mrb[24].mxu0  ;;  %6234 = vmatprep.subr.bf16.mxu1 %v5277_v8  ;;  %v6277_v31 = vpack.c.bf16 %v8244_v21, %v8242_v20 }
 0x2d8   : > { %v6337_v45 = vadd.f32 %v6173_v41, %v8091_v32  ;;  %v4031_v23 = vpop.f32.mrb[25].mxu0  ;;  %6236 = vmatpush3.bf16.msra.mxu1 %v8154_v56 }
 0x2d9   : > { %v6338_v18 = vadd.f32 %v4031_v23, %v8093_v44  ;;  %v6174_v63 = vpop.f32.mrb[26].mxu0  ;;  %6238 = vmatprep.subr.bf16.mxu1 %v5282_v30 }
 0x2da   : > { %v6339_v27 = vadd.f32 %v6174_v63, %v8095_v46  ;;  %v4034_v59 = vpop.f32.mrb[27].mxu0  ;;  %v8257_v11 = vmul.f32 %v6337_v45, %v6337_v45 }
 0x2db   : > { %v6340_v19 = vadd.f32 %v4034_v59, %v8097_v1  ;;  %v8262_v32 = vmul.f32 %v6338_v18, %v6338_v18 }
 0x2dc   : > { %v5292_v17 = vpack.c.bf16 %v6339_v27, %v6337_v45  ;;  %v8259_v8 = vmul.f32 %v6339_v27, %v6339_v27  ;;  %6240 = vmatpush3.bf16.msra.mxu1 %v8148_v26 }
 0x2dd   : > { %v5287_v56 = vpack.c.bf16 %v6340_v19, %v6338_v18  ;;  %v8264_v41 = vmul.f32 %v6340_v19, %v6340_v19 }
 0x2de   : > { %5336 = vst [vmem:[%s8136_s28 + $0x68] sm:$0xff] %v5292_v17   ;;  %v6289_v44 = vpack.c.bf16 %v8259_v8, %v8257_v11 }
 0x2df   : > { %5335 = vst [vmem:[%s8136_s28 + $0x60] sm:$0xff] %v5287_v56   ;;  %v6177_v46 = vpop.f32.mrb[28].mxu0  ;;  %6242 = vmatprep.subr.bf16.mxu1 %v5287_v56  ;;  %v6285_v1 = vpack.c.bf16 %v8264_v41, %v8262_v32 }
 0x2e0   : > { %v6341_v30 = vadd.f32 %v6177_v46, %v8099_v6  ;;  %v4047_v45 = vpop.f32.mrb[29].mxu0  ;;  %6244 = vmatpush3.bf16.msra.mxu1 %v8178_v0 }
 0x2e1   : > { %v6342_v26 = vadd.f32 %v4047_v45, %v8101_v29  ;;  %v6178_v23 = vpop.f32.mrb[30].mxu0  ;;  %6246 = vmatprep.subr.bf16.mxu1 %v5292_v17 }
 0x2e2   : > { %v6343_v18 = vadd.f32 %v6178_v23, %v8103_v37  ;;  %v4050_v63 = vpop.f32.mrb[31].mxu0  ;;  %v8277_v59 = vmul.f32 %v6341_v30, %v6341_v30 }
 0x2e3   : > { %v6344_v27 = vadd.f32 %v4050_v63, %v8105_v53  ;;  %v8282_v6 = vmul.f32 %v6342_v26, %v6342_v26 }
 0x2e4   : > { %v5302_v19 = vpack.c.bf16 %v6343_v18, %v6341_v30  ;;  %v8279_v56 = vmul.f32 %v6343_v18, %v6343_v18  ;;  %6248 = vmatpush3.bf16.msra.mxu1 %v8172_v9 }
 0x2e5   : > { %v5297_v0 = vpack.c.bf16 %v6344_v27, %v6342_v26  ;;  %v8284_v46 = vmul.f32 %v6344_v27, %v6344_v27 }
 0x2e6   : > { %5338 = vst [vmem:[%s8136_s28 + $0x78] sm:$0xff] %v5302_v19   ;;  %v8554_v5 = vpack.c.bf16 %v8279_v56, %v8277_v59 }
 0x2e7   : > { %5337 = vst [vmem:[%s8136_s28 + $0x70] sm:$0xff] %v5297_v0   ;;  %v6181_v37 = vpop.f32.mrb[32].mxu0  ;;  %6250 = vmatprep.subr.bf16.mxu1 %v5297_v0  ;;  %v6293_v53 = vpack.c.bf16 %v8284_v46, %v8282_v6 }
 0x2e8   : > { %v6345_v17 = vadd.f32 %v6181_v37, %v8107_v61  ;;  %v4063_v30 = vpop.f32.mrb[33].mxu0  ;;  %6252 = vmatpush3.bf16.msra.mxu1 %v8202_v22  ;;  %v4454_v61 = vld [vmem:[#allocation8] sm:$0xff] }
 0x2e9   : > { %v6346_v9 = vadd.f32 %v4063_v30, %v8109_v62  ;;  %v6182_v45 = vpop.f32.mrb[34].mxu0  ;;  %6254 = vmatprep.subr.bf16.mxu1 %v5302_v19  ;;  %v7051_v30 = vmov 0.0|0.0  }
 0x2ea   : > { %v6347_v26 = vadd.f32 %v6182_v45, %v8111_v35  ;;  %v4066_v23 = vpop.f32.mrb[35].mxu0  ;;  %v8297_v63 = vmul.f32 %v6345_v17, %v6345_v17 }
 0x2eb   : > { %v6348_v18 = vadd.f32 %v4066_v23, %v8113_v3  ;;  %v4634_v22 = vmul.f32 %v6346_v9, %v6346_v9 }
 0x2ec   : > { %v5312_v27 = vpack.c.bf16 %v6347_v26, %v6345_v17  ;;  %v8299_v0 = vmul.f32 %v6347_v26, %v6347_v26  ;;  %6256 = vmatpush3.bf16.msra.mxu1 %v8196_v2  ;;  %v7053_v2 = vmov 0.0  }
 0x2ed   : > { %v5307_v37 = vpack.c.bf16 %v6348_v18, %v6346_v9  ;;  %v4635_v62 = vmul.f32 %v6348_v18, %v6348_v18  ;;  %6257 = vmatprep.subr.bf16.mxu1 %v7051_v30 }
 0x2ee   : > { %5340 = vst [vmem:[%s8136_s28 + $0x88] sm:$0xff] %v5312_v27   ;;  %v6305_v35 = vpack.c.bf16 %v8299_v0, %v8297_v63 }
 0x2ef   : > { %5339 = vst [vmem:[%s8136_s28 + $0x80] sm:$0xff] %v5307_v37   ;;  %v6302_v19 = vpack.c.bf16 %v4635_v62, %v4634_v22  ;;  %v6185_v3 = vpop.f32.mrb[36].mxu0  ;;  %4526 = vmatmul.mubr.f32.vlgmr.msra.gmra.mrb[40].mxu1 %v4454_v61 }
 0x2f0   : > { %v6349_v17 = vadd.f32 %v6185_v3, %v8115_v58  ;;  %v4079_v45 = vpop.f32.mrb[37].mxu0  ;;  %6259 = vmatpush3.bf16.msra.mxu1 %v5307_v37  ;;  %6203 = vmatprep.mubr.msk.f32.mxu1 %vm7052_vm2, %v7053_v2 }
 0x2f1   : > { %v6350_v9 = vadd.f32 %v4079_v45, %v8117_v54  ;;  %v6186_v26 = vpop.f32.mrb[38].mxu0  ;;  %6260 = vmatprep.subr.bf16.mxu1 %v7051_v30  ;;  %v4456_v45 = vld [vmem:[#allocation8 + $0x10] sm:$0xff] }
 0x2f2   : > { %v6351_v23 = vadd.f32 %v6186_v26, %v8119_v50  ;;  %v4082_v18 = vpop.f32.mrb[39].mxu0  ;;  %v4640_v0 = vmul.f32 %v6349_v17, %v6349_v17  ;;  %v8548_v50 = vpack.c.bf16 %v8128_v49, %v8124_v36  ;;  %v8551_v36 = vpack.c.bf16 %v8180_v51, %v8176_v33 }
 0x2f3   : > { %v6352_v63 = vadd.f32 %v4082_v18, %v8121_v10  ;;  %v4638_v37 = vmul.f32 %v6350_v9, %v6350_v9  ;;  %v8549_v10 = vpack.c.bf16 %v8156_v28, %v8152_v43  ;;  %v8552_v49 = vpack.c.bf16 %v8174_v55, %v8170_v34 }
 0x2f4   : > { %v5322_v22 = vpack.c.bf16 %v6351_v23, %v6349_v17  ;;  %v4641_v58 = vmul.f32 %v6351_v23, %v6351_v23  ;;  %6262 = vmatpush3.bf16.msra.mxu1 %v5312_v27 }
 0x2f5   : > { %v5317_v62 = vpack.c.bf16 %v6352_v63, %v6350_v9  ;;  %v4639_v3 = vmul.f32 %v6352_v63, %v6352_v63  ;;  %6263 = vmatprep.subr.bf16.mxu1 %v7051_v30 }
 0x2f6   : > { %5342 = vst [vmem:[%s8136_s28 + $0x98] sm:$0xff] %v5322_v22   ;;  %v6311_v29 = vpack.c.bf16 %v4641_v58, %v4640_v0 }
 0x2f7   : > { %5341 = vst [vmem:[%s8136_s28 + $0x90] sm:$0xff] %v5317_v62   ;;  %v6308_v54 = vpack.c.bf16 %v4639_v3, %v4638_v37 }
 0x2f8   : > { %6265 = vmatpush3.bf16.msra.mxu1 %v5317_v62 }
 0x2f9   : > { %6266 = vmatprep.subr.bf16.mxu1 %v7051_v30 }
 0x2fc   : > { %6268 = vmatpush3.bf16.msra.mxu1 %v5322_v22 }
 0x2fd   : > { %6270 = vmatprep.subr.bf16.mxu1 %v6269_v52 }
 0x2ff   : > { %6204 = vmatmul.mubr.msk.f32.vlgmr.msra.gmra.mrb[42].mxu1 %vm4457_vm3, %v4456_v45 }
 0x300   : > { %6272 = vmatpush3.bf16.msra.mxu1 %v6271_v60  ;;  %4706 = vmatprep.mubr.f32.mxu1 %v8064_v57  ;;  %v8550_v57 = vpack.c.bf16 %v8150_v14, %v8146_v40 }
 0x301   : > { %6274 = vmatprep.subr.bf16.mxu1 %v6273_v39 }
 0x304   : > { %6276 = vmatpush3.bf16.msra.mxu1 %v8548_v50 }
 0x305   : > { %6278 = vmatprep.subr.bf16.mxu1 %v6277_v31 }
 0x308   : > { %6280 = vmatpush3.bf16.msra.mxu1 %v8549_v10 }
 0x309   : > { %6282 = vmatprep.subr.bf16.mxu1 %v6281_v42 }
 0x30c   : > { %6284 = vmatpush3.bf16.msra.mxu1 %v8550_v57 }
 0x30d   : > { %6286 = vmatprep.subr.bf16.mxu1 %v6285_v1 }
 0x310   : > { %6288 = vmatpush3.bf16.msra.mxu1 %v8551_v36 }
 0x311   : > { %6290 = vmatprep.subr.bf16.mxu1 %v6289_v44 }
 0x314   : > { %6292 = vmatpush3.bf16.msra.mxu1 %v8552_v49 }
 0x315   : > { %6294 = vmatprep.subr.bf16.mxu1 %v6293_v53 }
 0x318   : > { %6296 = vmatpush3.bf16.msra.mxu1 %v8553_v15 }
 0x319   : > { %6298 = vmatprep.subr.bf16.mxu1 %v8554_v5 }
 0x31c   : > { %6300 = vmatpush3.bf16.msra.mxu1 %v8555_v24 }
 0x31d   : > { %6301 = vmatprep.subr.bf16.mxu1 %v7051_v30 }
 0x31f   : > { %4707 = vmatmul.mubr.f32.vlgmr.msra.gmra.mrb[44].mxu1 %v4454_v61 }
 0x320   : > { %6303 = vmatpush3.bf16.msra.mxu1 %v6302_v19  ;;  %6222 = vmatprep.mubr.msk.f32.mxu1 %vm7052_vm2, %v7053_v2 }
 0x321   : > { %6304 = vmatprep.subr.bf16.mxu1 %v7051_v30 }
 0x324   : > { %6306 = vmatpush3.bf16.msra.mxu1 %v6305_v35 }
 0x325   : > { %6307 = vmatprep.subr.bf16.mxu1 %v7051_v30 }
 0x328   : > { %6309 = vmatpush3.bf16.msra.mxu1 %v6308_v54 }
 0x329   : > { %6310 = vmatprep.subr.bf16.mxu1 %v7051_v30 }
 0x32c   : > { %6312 = vmatpush3.bf16.msra.mxu1 %v6311_v29 }
 0x32f   : > { %6223 = vmatmul.mubr.msk.f32.vlgmr.msra.gmra.mrb[46].mxu1 %vm4457_vm3, %v4456_v45 }
 0x330   : > { %6910 = shalt.err (!%p6907_p2)
}
 0x331   : > { %s6911_s9 = scalar_lea.hbm %s8370_s11, 2560  ;;  %s6915_s17 = scalar_lea.hbm %s8491_s3, 5120 }
 0x332   : > { %p6912_p6 = scmp.ne.s32.totalorder %s8370_s11, %s6911_s9  ;;  %p6916_p4 = scmp.lt.u32.totalorder %s8370_s11, %s8491_s3 }
 0x333   : > { %p6917_p9 = scmp.lt.u32.totalorder %s6915_s17, %s6911_s9  ;;  %p6919_p11 = scmp.lt.u32.totalorder %s6911_s9, %s8370_s11 }
 0x334   : > { %p6913_p10 = pnand %p6912_p6, %p8556_p1 }
 0x335   : > { %p6918_p8 = por %p6917_p9, %p6916_p4 }
 0x336   : > { %p6914_p3 = pneg %p6913_p10 }
 0x337   : > { %p6920_p13 = por %p6919_p11, %p6918_p8 }
 0x339   : > { %p6921_p5 = pnand %p6920_p13, %p6914_p3 }
 0x33b   : > { %6924 = shalt.err (!%p6921_p5)
}
 0x33c   : > { %s7055_s29 = smov 64   ;;  %s7056_s8 = smov 4  }
 0x33d   : > { %6648 = dma.vmem_to_hbm [thread:$0]  (%p8556_p1), %s8372_s14, 2560, %s8370_s11, %s4784_s25, %s7055_s29, %s7055_s29, %s7056_s8  }
 0x33e   : > { %s5013_s30 = sshll.u32 %s7279_s16, 3  ;;  %s4788_s13 = sand.u32 1, %s7120_s24  }
 0x33f   : > { %s5180_s9 = sshll.u32 %s7035_s21, 7  ;;  %s305_s26 = scalar_lea.vmem [#allocation10], %s5013_s30 }
 0x340   : > { %s4825_s28 = sshll.u32 %s305_s26, 4  ;;  %s8408_s12 = scalar_lea.hbm %s8492_s4, %s5180_s9  ;;  %s8410_s28 = int_to_ptr.vmem [resolvable:$true] %s4825_s28 }
 0x341   : > { %s8412_s24 = scalar_lea.sflag [#allocation11], %s4788_s13  ;;  %s6925_s14 = scalar_lea.vmem %s8410_s28, 128 }
 0x342   : > { %p6926_p7 = scmp.ne.s32.totalorder %s8410_s28, %s6925_s14  ;;  %s7057_s11 = smov [#allocation10]  }
 0x343   : > { %s6929_s25 = sshll.u32 %s7057_s11, 4  ;;  %s6930_s25 = int_to_ptr.vmem [resolvable:$false] %s6929_s25 }
 0x344   : > { %p6927_p12 = pnand %p6926_p7, %p8556_p1  ;;  %s6931_s29 = scalar_lea.vmem %s6930_s25, 256 }
 0x345   : > { %p6932_p2 = scmp.lt.s32.totalorder %s8410_s28, %s6930_s25  ;;  %p6933_p6 = scmp.lt.s32.totalorder %s6931_s29, %s6925_s14 }
 0x346   : > { %p6928_p0 = pneg %p6927_p12 }
 0x347   : > { %p6934_p10 = por %p6933_p6, %p6932_p2 }
 0x349   : > { %p6935_p3 = pnand %p6934_p10, %p6928_p0 }
 0x3c2   : > { %v5627_v60 = vpop.f32.mrb[40].mxu1 }
 0x3c3   : > { %v5628_v40 = vpop.f32.mrb[41].mxu1 }
 0x3c4   : > { %v5629_v14 = vadd.f32 %v5628_v40, %v5627_v60 }
 0x3d2   : > { %v4597_v43 = vpop.f32.mrb[42].mxu1 }
 0x3d3   : > { %v4598_v28 = vadd.f32 %v5629_v14, %v4597_v43  ;;  %v6205_v7 = vpop.f32.mrb[43].mxu1 }
 0x3d5   : > { %4601 = vst [vmem:[%s305_s26] sm:$0xff] %v4598_v28 }
 0x3d6   : > { %6938 = shalt.err (!%p6935_p3)
}
 0x3d7   : > { %s6939_s8 = scalar_lea.hbm %s8408_s12, 128  ;;  %s6943_s17 = scalar_lea.hbm %s8492_s4, 256 }
 0x3d8   : > { %p6940_p4 = scmp.ne.s32.totalorder %s8408_s12, %s6939_s8  ;;  %p6944_p11 = scmp.lt.u32.totalorder %s8408_s12, %s8492_s4 }
 0x3d9   : > { %p6945_p13 = scmp.lt.u32.totalorder %s6943_s17, %s6939_s8  ;;  %p6947_p7 = scmp.lt.u32.totalorder %s6939_s8, %s8408_s12 }
 0x3da   : > { %p6941_p9 = pnand %p6940_p4, %p8556_p1 }
 0x3db   : > { %p6946_p5 = por %p6945_p13, %p6944_p11 }
 0x3dc   : > { %p6942_p8 = pneg %p6941_p9 }
 0x3dd   : > { %p6948_p12 = por %p6947_p7, %p6946_p5 }
 0x3df   : > { %p6949_p0 = pnand %p6948_p12, %p6942_p8 }
 0x3e1   : > { %6952 = shalt.err (!%p6949_p0)
}
 0x3e2   : > { %6649 = dma.vmem_to_hbm [thread:$0]  (%p8556_p1), %s8410_s28, 128, %s8408_s12, %s8412_s24  }
 0x3e3   : > { %s312_s14 = scalar_lea.vmem [#allocation12], %s5013_s30  ;;  %s8443_s13 = scalar_lea.hbm %s8493_s5, %s5180_s9 }
 0x3e4   : > { %s4839_s25 = sshll.u32 %s312_s14, 4  ;;  %s7058_s28 = smov [#allocation12]   ;;  %s4840_s25 = int_to_ptr.vmem [resolvable:$true] %s4839_s25 }
 0x3e5   : > { %s6953_s26 = scalar_lea.vmem %s4840_s25, 128  ;;  %s6957_s16 = sshll.u32 %s7058_s28, 4  ;;  %s6958_s16 = int_to_ptr.vmem [resolvable:$false] %s6957_s16 }
 0x3e6   : > { %p6954_p2 = scmp.ne.s32.totalorder %s4840_s25, %s6953_s26  ;;  %s6959_s30 = scalar_lea.vmem %s6958_s16, 256 }
 0x3e7   : > { %p6960_p3 = scmp.lt.s32.totalorder %s4840_s25, %s6958_s16  ;;  %p6961_p4 = scmp.lt.s32.totalorder %s6959_s30, %s6953_s26 }
 0x3e8   : > { %p6955_p6 = pnand %p6954_p2, %p8556_p1 }
 0x3e9   : > { %p6962_p9 = por %p6961_p4, %p6960_p3 }
 0x3ea   : > { %p6956_p10 = pneg %p6955_p6 }
 0x3ec   : > { %p6963_p8 = pnand %p6962_p9, %p6956_p10 }
 0x3f2   : > { %v5671_v12 = vpop.f32.mrb[44].mxu1 }
 0x3f3   : > { %v5672_v34 = vpop.f32.mrb[45].mxu1 }
 0x3f4   : > { %v5673_v55 = vadd.f32 %v5672_v34, %v5671_v12 }
 0x402   : > { %v4778_v33 = vpop.f32.mrb[46].mxu1 }
 0x403   : > { %v4779_v51 = vadd.f32 %v5673_v55, %v4778_v33  ;;  %v6224_v48 = vpop.f32.mrb[47].mxu1 }
 0x405   : > { %4782 = vst [vmem:[%s312_s14] sm:$0xff] %v4779_v51 }
 0x406   : > { %6966 = shalt.err (!%p6963_p8)
}
 0x407   : > { %s6967_s21 = scalar_lea.hbm %s8443_s13, 128  ;;  %s6971_s17 = scalar_lea.hbm %s8493_s5, 256 }
 0x408   : > { %p6968_p11 = scmp.ne.s32.totalorder %s8443_s13, %s6967_s21  ;;  %p6972_p7 = scmp.lt.u32.totalorder %s8443_s13, %s8493_s5 }
 0x409   : > { %p6973_p12 = scmp.lt.u32.totalorder %s6971_s17, %s6967_s21  ;;  %p6975_p2 = scmp.lt.u32.totalorder %s6967_s21, %s8443_s13 }
 0x40a   : > { %p6969_p13 = pnand %p6968_p11, %p8556_p1 }
 0x40b   : > { %p6974_p0 = por %p6973_p12, %p6972_p7 }
 0x40c   : > { %p6970_p5 = pneg %p6969_p13 }
 0x40d   : > { %p6976_p6 = por %p6975_p2, %p6974_p0 }
 0x40f   : > { %p6977_p10 = pnand %p6976_p6, %p6970_p5 }
 0x411   : > { %6980 = shalt.err (!%p6977_p10)
}
 0x412   : > { %6650 = dma.vmem_to_hbm [thread:$0]  (%p8556_p1), %s4840_s25, 128, %s8443_s13, %s8412_s24  }
 0x413 PF: > { %s4851_s14 = sand.u32 1, %s7023_s18   ;;  %p8557_p3 = scmp.ne.s32.totalorder %s8514_s27, 0 }
 0x414   : > { %p8558_p4 = scmp.ge.s32.totalorder %s7043_s23, 2  ;;  %s4852_s29 = scalar_lea.sflag [#allocation5], %s4851_s14 }
 0x416   : > { %p6666_p9 = pnand %p8558_p4, %p8557_p3 }
 0x418   : > { %7014 = dma.done.wait (!%p6666_p9), %s4852_s29, 2560  }
 0x419   : > { %7016 = vsyncadd (!%p6666_p9), %s4852_s29, 4294964736  ;;  %s8559_s8 = sadd.s32 4294967294, %s7043_s23  }
 0x41a   : > { %s4860_s26 = sand.u32 1, %s8559_s8  }
 0x41b   : > { %s4861_s28 = scalar_lea.sflag [#allocation11], %s4860_s26 }
 0x41c   : > { %7018 = dma.done.wait (!%p6666_p9), %s4861_s28, 256  }
 0x41d   : > { %7020 = vsyncadd (!%p6666_p9), %s4861_s28, 4294967040  ;;  %s26_s23 = sadd.s32 1, %s7043_s23   ;;  %s8560_s18 = smov %s7027_s19 }
 0x41e   : > { %p23_p1 = scmp.ge.s32.totalorder %s26_s23, 4   ;;  %s8561_s19 = smov %s7031_s20 }
 0x41f   : > { %s8562_s20 = smov %s7235_s15  ;;  %s8563_s21 = smov %s7039_s22 }
 0x420   : > { %s8564_s22 = smov %s8566_s10  ;;  %25 = sbr.rel (!%p23_p1) target bundleno = 9 (0x9), region = 126 }
 0x427   :  { %4875 = vsyncpa [#allocation4], 1 }
 0x428   :  { %4877 = vsyncpa [#allocation4 + $0x1], 1 }
 0x429   :  { %4878 = vsyncpa [#allocation7], 1 }
 0x42a   :  { %4879 = vsyncpa [#allocation5], 1 }
 0x42b   :  { %4881 = vsyncpa [#allocation5 + $0x1], 1 }
 0x42c   :  { %4882 = vsyncpa [#allocation11], 1 }
 0x42d   :  { %4884 = vsyncpa [#allocation11 + $0x1], 1 }

</bundles_post_ra>
